<compile_context>
chip_gen: v7x
topology: tpu7x:2x2x1
jax: 0.10.0
libtpu: 0.0.40
codegen_flags: <defaults>
</compile_context>

<pallas_src>
import jax
import jax.numpy as jnp
from jax.experimental import pallas as pl
from jax.experimental.pallas import tpu as pltpu

EPS = 1e-5  # nn.BatchNorm1d default eps


def _round_up(x, m):
    return ((x + m - 1) // m) * m


def _batchnorm(v, gamma, beta):
    """nn.BatchNorm1d in training mode: biased batch statistics + affine."""
    mu = jnp.mean(v, axis=0, keepdims=True)
    var = jnp.mean((v - mu) * (v - mu), axis=0, keepdims=True)
    return (v - mu) * jax.lax.rsqrt(var + EPS) * gamma + beta


# ---------------------------------------------------------------------------
# Kernel 1 (prologue): w2[i, c] = sum_{a,b} x[i,a] * r[i,b] * core[a,b,c]
# ---------------------------------------------------------------------------
def _w2_kernel(subj_ref, rel_ref, g0_ref, b0_ref, g1_ref, b1_ref, core_ref,
               w2_ref):
    x = _batchnorm(subj_ref[...], g0_ref[...], b0_ref[...])   # bn0(subjects) (B, de)
    r = _batchnorm(rel_ref[...], g1_ref[...], b1_ref[...])    # bn1(relations) (B, dr)
    # input_dropout / hidden_dropout1 / hidden_dropout2 have p=0 -> identity.

    de = core_ref.shape[0]
    lanes = jax.lax.broadcasted_iota(jnp.int32, x.shape, 1)   # lane ids, (B, de)

    acc = jnp.zeros(w2_ref.shape, jnp.float32)
    # Unrolled contraction over the first core mode `a`:
    #   w2 += x[:, a] * (r @ core[a])    (one (B,dr)x(dr,de) MXU matmul per a)
    # The single column x[:, a] is extracted by mask + lane-reduce, which only
    # uses bulletproof Mosaic ops (iota, select, lane reduce, trailing-1 bcast).
    for a in range(de):
        x_a = jnp.sum(jnp.where(lanes == a, x, 0.0), axis=1, keepdims=True)  # (B, 1)
        w1_a = jnp.dot(r, core_ref[a], preferred_element_type=jnp.float32)   # (B, de)
        acc = acc + x_a * w1_a
    w2_ref[...] = acc


# ---------------------------------------------------------------------------
# Kernel 2 (hot path): out[i, n] = sigmoid( sum_c w2[i, c] * E[n, c] )
# ---------------------------------------------------------------------------
def _logits_kernel(w2_ref, e_ref, out_ref):
    e = e_ref[...].astype(jnp.float32)        # upcast the (possibly bf16) stream on-chip
    logits = jax.lax.dot_general(
        w2_ref[...], e,
        dimension_numbers=(((1,), (1,)), ((), ())),   # contract on de: no transpose needed
        preferred_element_type=jnp.float32)
    out_ref[...] = jax.nn.sigmoid(logits)     # f32 sigmoid, lane-dense f32 store


# ---------------------------------------------------------------------------
# Wrappers
# ---------------------------------------------------------------------------
def pick_tile_n(n_entities, max_tile=1024):
    """Lane-dense entity tile: a multiple of 128, capped for VMEM headroom."""
    return min(max_tile, _round_up(n_entities, 128))


def prepare_entity_table(entity_weights, tile_n, dtype=jnp.bfloat16):
    """One-time prep of the streamed entity table: pad rows to a multiple of the
    tile and (optionally) downcast to bf16.  The natural (ne, de) layout is kept,
    so no per-call transpose of the largest tensor is ever materialized; cache the
    result outside the train step and refresh only when the embeddings change."""
    ne, _ = entity_weights.shape
    ne_pad = _round_up(ne, tile_n)
    e = entity_weights.astype(dtype)
    if ne_pad != ne:
        e = jnp.pad(e, ((0, ne_pad - ne), (0, 0)))
    return e


def r_tucker_forward(subject_idx, relation_idx, params, e_table=None, *,
                     tile_n=None, stream_dtype=jnp.bfloat16):
    S_w = params["S"]            # (ne, de) entity embeddings
    R_w = params["R"]            # (nr, dr) relation embeddings
    core = params["core"]        # (de, dr, de) Tucker core
    ne, de = S_w.shape
    B = subject_idx.shape[0]

    if tile_n is None:
        tile_n = pick_tile_n(ne)
    if e_table is None:
        e_table = prepare_entity_table(S_w, tile_n, stream_dtype)
    ne_pad = e_table.shape[0]
    assert ne_pad % tile_n == 0 and e_table.shape[1] == de

    # Embedding gathers (B rows, cheap).
    # TODO(synk): could be moved in-kernel via PrefetchScalarGridSpec + pl.Element
    # index_maps to skip one small HBM round trip at large training batch sizes.
    subjects = jnp.take(S_w, subject_idx, axis=0)        # (B, de)
    relations = jnp.take(R_w, relation_idx, axis=0)      # (B, dr)

    vmem = pl.BlockSpec(memory_space=pltpu.MemorySpace.VMEM)

    # ---- prologue: batchnorms + per-row core contraction -> w2 (B, de) -------
    # TODO(synk): for very large cores (de*dr*de*4 beyond the scoped VMEM limit)
    # this prologue should itself tile the core; at typical KG sizes it is
    # negligible next to the entity stream below.
    w2 = pl.pallas_call(
        _w2_kernel,
        out_shape=jax.ShapeDtypeStruct((B, de), jnp.float32),
        in_specs=[vmem] * 7,
        out_specs=vmem,
    )(subjects, relations,
      params["bn0_gamma"], params["bn0_beta"],
      params["bn1_gamma"], params["bn1_beta"],
      core)

    # ---- main: tiled, pipelined entity-table stream + sigmoid ----------------
    B_pad = _round_up(B, 8)                  # f32 sublane-dense batch for the matmul
    w2p = w2 if B_pad == B else jnp.pad(w2, ((0, B_pad - B), (0, 0)))

    num_tiles = ne_pad // tile_n
    out = pl.pallas_call(
        _logits_kernel,
        out_shape=jax.ShapeDtypeStruct((B_pad, ne_pad), jnp.float32),
        grid=(num_tiles,),
        in_specs=[
            pl.BlockSpec((B_pad, de), lambda j: (0, 0)),    # w2: resident across grid
            pl.BlockSpec((tile_n, de), lambda j: (j, 0)),   # entity tile: streamed/pipelined
        ],
        out_specs=pl.BlockSpec((B_pad, tile_n), lambda j: (0, j)),  # lane-dense stores
        compiler_params=pltpu.CompilerParams(
            dimension_semantics=("parallel",),   # v7x: split entity tiles across 2 TCs
            vmem_limit_bytes=32 * 1024 * 1024,
        ),
    )(w2p, e_table)

    return out[:B, :ne]


def reference_forward(subject_idx, relation_idx, params):
    """Pure-JAX reference mirroring the PyTorch code (full (B,B,ne) tensor + diag)."""
    S_w, R_w, core = params["S"], params["R"], params["core"]
    subjects = jnp.take(S_w, subject_idx, axis=0)
    relations = jnp.take(R_w, relation_idx, axis=0)

    def bn(v, g, b):
        mu = v.mean(0, keepdims=True)
        var = ((v - mu) ** 2).mean(0, keepdims=True)
        return (v - mu) / jnp.sqrt(var + EPS) * g + b

    r = bn(relations, params["bn1_gamma"], params["bn1_beta"])
    x = bn(subjects, params["bn0_gamma"], params["bn0_beta"])
    t1 = jnp.einsum('abc,ib->aic', core, r)     # k_mode_product(1, relations)
    t2 = jnp.einsum('aic,ja->jic', t1, x)       # k_mode_product(0, x)
    t3 = jnp.einsum('jic,nc->jin', t2, S_w)     # k_mode_product(2, S.weight)
    pred = jax.nn.sigmoid(t3)                   # (B, B, ne)
    B = subjects.shape[0]
    idx = jnp.arange(B)
    return pred[idx, idx, :]                    # preds[i] = pred[i, i, :]


if __name__ == "__main__":
    key = jax.random.PRNGKey(0)
    ne, nr = 64, 12          # data_count = (entities_count, relations_count)
    de, dr = 32, 16          # embeddings_dim = (entities_dim, relations_dim)
    B = 8                    # batch size

    k1, k2, k3, k4, k5 = jax.random.split(key, 5)
    params = {
        # xavier_normal_-style init for embeddings, randn core (deterministic in-script)
        "S": jax.random.normal(k1, (ne, de), jnp.float32) * (2.0 / (ne + de)) ** 0.5,
        "R": jax.random.normal(k2, (nr, dr), jnp.float32) * (2.0 / (nr + dr)) ** 0.5,
        "core": jax.random.normal(k3, (de, dr, de), jnp.float32),
        # BatchNorm1d affine params at their default init (gamma=1, beta=0)
        "bn0_gamma": jnp.ones((1, de), jnp.float32),
        "bn0_beta": jnp.zeros((1, de), jnp.float32),
        "bn1_gamma": jnp.ones((1, dr), jnp.float32),
        "bn1_beta": jnp.zeros((1, dr), jnp.float32),
    }
    subject_idx = jax.random.randint(k4, (B,), 0, ne)
    relation_idx = jax.random.randint(k5, (B,), 0, nr)

    # TODO(synk): the PyTorch forward also returns a `forward_core` closure that
    # computes BCELoss against targets; only the numeric `preds` output is kernelized.
    ref = reference_forward(subject_idx, relation_idx, params)
    tile_n = pick_tile_n(ne)

    # 1) f32 entity stream: tight numerical check against the pure-JAX reference.
    e_f32 = prepare_entity_table(params["S"], tile_n, jnp.float32)
    preds = r_tucker_forward(subject_idx, relation_idx, params, e_f32, tile_n=tile_n)
    preds = jax.block_until_ready(preds)
    assert preds.shape == (B, ne), preds.shape
    err_f32 = float(jnp.max(jnp.abs(preds - ref)))
    assert jnp.allclose(preds, ref, atol=1e-3, rtol=1e-3), err_f32

    # 2) bf16 entity stream (production config: halves the dominant HBM traffic),
    #    f32 accumulation + f32 sigmoid; looser tolerance per the bf16 rounding.
    e_bf16 = prepare_entity_table(params["S"], tile_n, jnp.bfloat16)
    preds_bf16 = r_tucker_forward(subject_idx, relation_idx, params, e_bf16,
                                  tile_n=tile_n)
    preds_bf16 = jax.block_until_ready(preds_bf16)
    err_bf16 = float(jnp.max(jnp.abs(preds_bf16 - ref)))
    assert err_bf16 < 5e-2, err_bf16

    print("KERNEL_OK")
</pallas_src>

<mosaic_0001>
module attributes {stable_mosaic.version = 11 : i64} {
  func.func @_w2_kernel(%arg0: memref<8x32xf32, #tpu.memory_space<vmem>>, %arg1: memref<8x16xf32, #tpu.memory_space<vmem>>, %arg2: memref<1x32xf32, #tpu.memory_space<vmem>>, %arg3: memref<1x32xf32, #tpu.memory_space<vmem>>, %arg4: memref<1x16xf32, #tpu.memory_space<vmem>>, %arg5: memref<1x16xf32, #tpu.memory_space<vmem>>, %arg6: memref<32x16x32xf32, #tpu.memory_space<vmem>>, %arg7: memref<8x32xf32, #tpu.memory_space<vmem>>) attributes {dimension_semantics = [], scalar_prefetch = 0 : i64, scratch_operands = 0 : i64, tpu.core_type = #tpu.core_type<tc>} {
    %c0 = arith.constant 0 : index
    %c0_0 = arith.constant 0 : index
    %0 = vector.load %arg0[%c0, %c0_0] : memref<8x32xf32, #tpu.memory_space<vmem>>, vector<8x32xf32>
    %c0_1 = arith.constant 0 : index
    %c0_2 = arith.constant 0 : index
    %1 = vector.load %arg2[%c0_1, %c0_2] : memref<1x32xf32, #tpu.memory_space<vmem>>, vector<1x32xf32>
    %c0_3 = arith.constant 0 : index
    %c0_4 = arith.constant 0 : index
    %2 = vector.load %arg3[%c0_3, %c0_4] : memref<1x32xf32, #tpu.memory_space<vmem>>, vector<1x32xf32>
    %cst = arith.constant dense<0.000000e+00> : vector<32xf32>
    %3 = vector.multi_reduction <add>, %0, %cst [0] : vector<8x32xf32> to vector<32xf32>
    %4 = vector.shape_cast %3 : vector<32xf32> to vector<1x32xf32>
    %cst_5 = arith.constant 8.000000e+00 : f32
    %5 = vector.broadcast %cst_5 : f32 to vector<1x32xf32>
    %6 = arith.divf %4, %5 : vector<1x32xf32>
    %7 = vector.broadcast %6 : vector<1x32xf32> to vector<8x32xf32>
    %8 = arith.subf %0, %7 : vector<8x32xf32>
    %9 = vector.broadcast %6 : vector<1x32xf32> to vector<8x32xf32>
    %10 = arith.subf %0, %9 : vector<8x32xf32>
    %11 = arith.mulf %8, %10 : vector<8x32xf32>
    %cst_6 = arith.constant dense<0.000000e+00> : vector<32xf32>
    %12 = vector.multi_reduction <add>, %11, %cst_6 [0] : vector<8x32xf32> to vector<32xf32>
    %13 = vector.shape_cast %12 : vector<32xf32> to vector<1x32xf32>
    %cst_7 = arith.constant 8.000000e+00 : f32
    %14 = vector.broadcast %cst_7 : f32 to vector<1x32xf32>
    %15 = arith.divf %13, %14 : vector<1x32xf32>
    %16 = vector.broadcast %6 : vector<1x32xf32> to vector<8x32xf32>
    %17 = arith.subf %0, %16 : vector<8x32xf32>
    %cst_8 = arith.constant 9.99999974E-6 : f32
    %18 = vector.broadcast %cst_8 : f32 to vector<1x32xf32>
    %19 = arith.addf %15, %18 : vector<1x32xf32>
    %20 = math.rsqrt %19 : vector<1x32xf32>
    %21 = vector.broadcast %20 : vector<1x32xf32> to vector<8x32xf32>
    %22 = arith.mulf %17, %21 : vector<8x32xf32>
    %23 = vector.broadcast %1 : vector<1x32xf32> to vector<8x32xf32>
    %24 = arith.mulf %22, %23 : vector<8x32xf32>
    %25 = vector.broadcast %2 : vector<1x32xf32> to vector<8x32xf32>
    %26 = arith.addf %24, %25 : vector<8x32xf32>
    %c0_9 = arith.constant 0 : index
    %c0_10 = arith.constant 0 : index
    %27 = vector.load %arg1[%c0_9, %c0_10] : memref<8x16xf32, #tpu.memory_space<vmem>>, vector<8x16xf32>
    %c0_11 = arith.constant 0 : index
    %c0_12 = arith.constant 0 : index
    %28 = vector.load %arg4[%c0_11, %c0_12] : memref<1x16xf32, #tpu.memory_space<vmem>>, vector<1x16xf32>
    %c0_13 = arith.constant 0 : index
    %c0_14 = arith.constant 0 : index
    %29 = vector.load %arg5[%c0_13, %c0_14] : memref<1x16xf32, #tpu.memory_space<vmem>>, vector<1x16xf32>
    %cst_15 = arith.constant dense<0.000000e+00> : vector<16xf32>
    %30 = vector.multi_reduction <add>, %27, %cst_15 [0] : vector<8x16xf32> to vector<16xf32>
    %31 = vector.shape_cast %30 : vector<16xf32> to vector<1x16xf32>
    %cst_16 = arith.constant 8.000000e+00 : f32
    %32 = vector.broadcast %cst_16 : f32 to vector<1x16xf32>
    %33 = arith.divf %31, %32 : vector<1x16xf32>
    %34 = vector.broadcast %33 : vector<1x16xf32> to vector<8x16xf32>
    %35 = arith.subf %27, %34 : vector<8x16xf32>
    %36 = vector.broadcast %33 : vector<1x16xf32> to vector<8x16xf32>
    %37 = arith.subf %27, %36 : vector<8x16xf32>
    %38 = arith.mulf %35, %37 : vector<8x16xf32>
    %cst_17 = arith.constant dense<0.000000e+00> : vector<16xf32>
    %39 = vector.multi_reduction <add>, %38, %cst_17 [0] : vector<8x16xf32> to vector<16xf32>
    %40 = vector.shape_cast %39 : vector<16xf32> to vector<1x16xf32>
    %cst_18 = arith.constant 8.000000e+00 : f32
    %41 = vector.broadcast %cst_18 : f32 to vector<1x16xf32>
    %42 = arith.divf %40, %41 : vector<1x16xf32>
    %43 = vector.broadcast %33 : vector<1x16xf32> to vector<8x16xf32>
    %44 = arith.subf %27, %43 : vector<8x16xf32>
    %cst_19 = arith.constant 9.99999974E-6 : f32
    %45 = vector.broadcast %cst_19 : f32 to vector<1x16xf32>
    %46 = arith.addf %42, %45 : vector<1x16xf32>
    %47 = math.rsqrt %46 : vector<1x16xf32>
    %48 = vector.broadcast %47 : vector<1x16xf32> to vector<8x16xf32>
    %49 = arith.mulf %44, %48 : vector<8x16xf32>
    %50 = vector.broadcast %28 : vector<1x16xf32> to vector<8x16xf32>
    %51 = arith.mulf %49, %50 : vector<8x16xf32>
    %52 = vector.broadcast %29 : vector<1x16xf32> to vector<8x16xf32>
    %53 = arith.addf %51, %52 : vector<8x16xf32>
    %54 = tpu.iota {dimensions = array<i32: 1>} : vector<8x32xi32>
    %cst_20 = arith.constant 0.000000e+00 : f32
    %55 = vector.broadcast %cst_20 : f32 to vector<8x32xf32>
    %c0_i32 = arith.constant 0 : i32
    %56 = vector.broadcast %c0_i32 : i32 to vector<8x32xi32>
    %57 = arith.cmpi eq, %54, %56 : vector<8x32xi32>
    %cst_21 = arith.constant 0.000000e+00 : f32
    %58 = vector.broadcast %cst_21 : f32 to vector<8x32xf32>
    %59 = arith.select %57, %26, %58 : vector<8x32xi1>, vector<8x32xf32>
    %cst_22 = arith.constant dense<0.000000e+00> : vector<8xf32>
    %60 = vector.multi_reduction <add>, %59, %cst_22 [1] : vector<8x32xf32> to vector<8xf32>
    %61 = vector.shape_cast %60 : vector<8xf32> to vector<8x1xf32>
    %c0_23 = arith.constant 0 : index
    %c0_24 = arith.constant 0 : index
    %c0_25 = arith.constant 0 : index
    %62 = vector.load %arg6[%c0_23, %c0_24, %c0_25] : memref<32x16x32xf32, #tpu.memory_space<vmem>>, vector<1x16x32xf32>
    %63 = vector.shape_cast %62 : vector<1x16x32xf32> to vector<16x32xf32>
    %cst_26 = arith.constant dense<0.000000e+00> : vector<8x32xf32>
    %64 = tpu.matmul %53, %63, %cst_26 {dimension_numbers = #tpu.dot_dimension_numbers<[1], [0], [0], [1], [0, 0, 1, 1], [], []>} : vector<8x16xf32>, vector<16x32xf32>, vector<8x32xf32> -> vector<8x32xf32>
    %65 = vector.broadcast %61 : vector<8x1xf32> to vector<8x32xf32>
    %66 = arith.mulf %65, %64 : vector<8x32xf32>
    %67 = arith.addf %55, %66 : vector<8x32xf32>
    %c1_i32 = arith.constant 1 : i32
    %68 = vector.broadcast %c1_i32 : i32 to vector<8x32xi32>
    %69 = arith.cmpi eq, %54, %68 : vector<8x32xi32>
    %cst_27 = arith.constant 0.000000e+00 : f32
    %70 = vector.broadcast %cst_27 : f32 to vector<8x32xf32>
    %71 = arith.select %69, %26, %70 : vector<8x32xi1>, vector<8x32xf32>
    %cst_28 = arith.constant dense<0.000000e+00> : vector<8xf32>
    %72 = vector.multi_reduction <add>, %71, %cst_28 [1] : vector<8x32xf32> to vector<8xf32>
    %73 = vector.shape_cast %72 : vector<8xf32> to vector<8x1xf32>
    %c1 = arith.constant 1 : index
    %c0_29 = arith.constant 0 : index
    %c0_30 = arith.constant 0 : index
    %74 = vector.load %arg6[%c1, %c0_29, %c0_30] : memref<32x16x32xf32, #tpu.memory_space<vmem>>, vector<1x16x32xf32>
    %75 = vector.shape_cast %74 : vector<1x16x32xf32> to vector<16x32xf32>
    %cst_31 = arith.constant dense<0.000000e+00> : vector<8x32xf32>
    %76 = tpu.matmul %53, %75, %cst_31 {dimension_numbers = #tpu.dot_dimension_numbers<[1], [0], [0], [1], [0, 0, 1, 1], [], []>} : vector<8x16xf32>, vector<16x32xf32>, vector<8x32xf32> -> vector<8x32xf32>
    %77 = vector.broadcast %73 : vector<8x1xf32> to vector<8x32xf32>
    %78 = arith.mulf %77, %76 : vector<8x32xf32>
    %79 = arith.addf %67, %78 : vector<8x32xf32>
    %c2_i32 = arith.constant 2 : i32
    %80 = vector.broadcast %c2_i32 : i32 to vector<8x32xi32>
    %81 = arith.cmpi eq, %54, %80 : vector<8x32xi32>
    %cst_32 = arith.constant 0.000000e+00 : f32
    %82 = vector.broadcast %cst_32 : f32 to vector<8x32xf32>
    %83 = arith.select %81, %26, %82 : vector<8x32xi1>, vector<8x32xf32>
    %cst_33 = arith.constant dense<0.000000e+00> : vector<8xf32>
    %84 = vector.multi_reduction <add>, %83, %cst_33 [1] : vector<8x32xf32> to vector<8xf32>
    %85 = vector.shape_cast %84 : vector<8xf32> to vector<8x1xf32>
    %c2 = arith.constant 2 : index
    %c0_34 = arith.constant 0 : index
    %c0_35 = arith.constant 0 : index
    %86 = vector.load %arg6[%c2, %c0_34, %c0_35] : memref<32x16x32xf32, #tpu.memory_space<vmem>>, vector<1x16x32xf32>
    %87 = vector.shape_cast %86 : vector<1x16x32xf32> to vector<16x32xf32>
    %cst_36 = arith.constant dense<0.000000e+00> : vector<8x32xf32>
    %88 = tpu.matmul %53, %87, %cst_36 {dimension_numbers = #tpu.dot_dimension_numbers<[1], [0], [0], [1], [0, 0, 1, 1], [], []>} : vector<8x16xf32>, vector<16x32xf32>, vector<8x32xf32> -> vector<8x32xf32>
    %89 = vector.broadcast %85 : vector<8x1xf32> to vector<8x32xf32>
    %90 = arith.mulf %89, %88 : vector<8x32xf32>
    %91 = arith.addf %79, %90 : vector<8x32xf32>
    %c3_i32 = arith.constant 3 : i32
    %92 = vector.broadcast %c3_i32 : i32 to vector<8x32xi32>
    %93 = arith.cmpi eq, %54, %92 : vector<8x32xi32>
    %cst_37 = arith.constant 0.000000e+00 : f32
    %94 = vector.broadcast %cst_37 : f32 to vector<8x32xf32>
    %95 = arith.select %93, %26, %94 : vector<8x32xi1>, vector<8x32xf32>
    %cst_38 = arith.constant dense<0.000000e+00> : vector<8xf32>
    %96 = vector.multi_reduction <add>, %95, %cst_38 [1] : vector<8x32xf32> to vector<8xf32>
    %97 = vector.shape_cast %96 : vector<8xf32> to vector<8x1xf32>
    %c3 = arith.constant 3 : index
    %c0_39 = arith.constant 0 : index
    %c0_40 = arith.constant 0 : index
    %98 = vector.load %arg6[%c3, %c0_39, %c0_40] : memref<32x16x32xf32, #tpu.memory_space<vmem>>, vector<1x16x32xf32>
    %99 = vector.shape_cast %98 : vector<1x16x32xf32> to vector<16x32xf32>
    %cst_41 = arith.constant dense<0.000000e+00> : vector<8x32xf32>
    %100 = tpu.matmul %53, %99, %cst_41 {dimension_numbers = #tpu.dot_dimension_numbers<[1], [0], [0], [1], [0, 0, 1, 1], [], []>} : vector<8x16xf32>, vector<16x32xf32>, vector<8x32xf32> -> vector<8x32xf32>
    %101 = vector.broadcast %97 : vector<8x1xf32> to vector<8x32xf32>
    %102 = arith.mulf %101, %100 : vector<8x32xf32>
    %103 = arith.addf %91, %102 : vector<8x32xf32>
    %c4_i32 = arith.constant 4 : i32
    %104 = vector.broadcast %c4_i32 : i32 to vector<8x32xi32>
    %105 = arith.cmpi eq, %54, %104 : vector<8x32xi32>
    %cst_42 = arith.constant 0.000000e+00 : f32
    %106 = vector.broadcast %cst_42 : f32 to vector<8x32xf32>
    %107 = arith.select %105, %26, %106 : vector<8x32xi1>, vector<8x32xf32>
    %cst_43 = arith.constant dense<0.000000e+00> : vector<8xf32>
    %108 = vector.multi_reduction <add>, %107, %cst_43 [1] : vector<8x32xf32> to vector<8xf32>
    %109 = vector.shape_cast %108 : vector<8xf32> to vector<8x1xf32>
    %c4 = arith.constant 4 : index
    %c0_44 = arith.constant 0 : index
    %c0_45 = arith.constant 0 : index
    %110 = vector.load %arg6[%c4, %c0_44, %c0_45] : memref<32x16x32xf32, #tpu.memory_space<vmem>>, vector<1x16x32xf32>
    %111 = vector.shape_cast %110 : vector<1x16x32xf32> to vector<16x32xf32>
    %cst_46 = arith.constant dense<0.000000e+00> : vector<8x32xf32>
    %112 = tpu.matmul %53, %111, %cst_46 {dimension_numbers = #tpu.dot_dimension_numbers<[1], [0], [0], [1], [0, 0, 1, 1], [], []>} : vector<8x16xf32>, vector<16x32xf32>, vector<8x32xf32> -> vector<8x32xf32>
    %113 = vector.broadcast %109 : vector<8x1xf32> to vector<8x32xf32>
    %114 = arith.mulf %113, %112 : vector<8x32xf32>
    %115 = arith.addf %103, %114 : vector<8x32xf32>
    %c5_i32 = arith.constant 5 : i32
    %116 = vector.broadcast %c5_i32 : i32 to vector<8x32xi32>
    %117 = arith.cmpi eq, %54, %116 : vector<8x32xi32>
    %cst_47 = arith.constant 0.000000e+00 : f32
    %118 = vector.broadcast %cst_47 : f32 to vector<8x32xf32>
    %119 = arith.select %117, %26, %118 : vector<8x32xi1>, vector<8x32xf32>
    %cst_48 = arith.constant dense<0.000000e+00> : vector<8xf32>
    %120 = vector.multi_reduction <add>, %119, %cst_48 [1] : vector<8x32xf32> to vector<8xf32>
    %121 = vector.shape_cast %120 : vector<8xf32> to vector<8x1xf32>
    %c5 = arith.constant 5 : index
    %c0_49 = arith.constant 0 : index
    %c0_50 = arith.constant 0 : index
    %122 = vector.load %arg6[%c5, %c0_49, %c0_50] : memref<32x16x32xf32, #tpu.memory_space<vmem>>, vector<1x16x32xf32>
    %123 = vector.shape_cast %122 : vector<1x16x32xf32> to vector<16x32xf32>
    %cst_51 = arith.constant dense<0.000000e+00> : vector<8x32xf32>
    %124 = tpu.matmul %53, %123, %cst_51 {dimension_numbers = #tpu.dot_dimension_numbers<[1], [0], [0], [1], [0, 0, 1, 1], [], []>} : vector<8x16xf32>, vector<16x32xf32>, vector<8x32xf32> -> vector<8x32xf32>
    %125 = vector.broadcast %121 : vector<8x1xf32> to vector<8x32xf32>
    %126 = arith.mulf %125, %124 : vector<8x32xf32>
    %127 = arith.addf %115, %126 : vector<8x32xf32>
    %c6_i32 = arith.constant 6 : i32
    %128 = vector.broadcast %c6_i32 : i32 to vector<8x32xi32>
    %129 = arith.cmpi eq, %54, %128 : vector<8x32xi32>
    %cst_52 = arith.constant 0.000000e+00 : f32
    %130 = vector.broadcast %cst_52 : f32 to vector<8x32xf32>
    %131 = arith.select %129, %26, %130 : vector<8x32xi1>, vector<8x32xf32>
    %cst_53 = arith.constant dense<0.000000e+00> : vector<8xf32>
    %132 = vector.multi_reduction <add>, %131, %cst_53 [1] : vector<8x32xf32> to vector<8xf32>
    %133 = vector.shape_cast %132 : vector<8xf32> to vector<8x1xf32>
    %c6 = arith.constant 6 : index
    %c0_54 = arith.constant 0 : index
    %c0_55 = arith.constant 0 : index
    %134 = vector.load %arg6[%c6, %c0_54, %c0_55] : memref<32x16x32xf32, #tpu.memory_space<vmem>>, vector<1x16x32xf32>
    %135 = vector.shape_cast %134 : vector<1x16x32xf32> to vector<16x32xf32>
    %cst_56 = arith.constant dense<0.000000e+00> : vector<8x32xf32>
    %136 = tpu.matmul %53, %135, %cst_56 {dimension_numbers = #tpu.dot_dimension_numbers<[1], [0], [0], [1], [0, 0, 1, 1], [], []>} : vector<8x16xf32>, vector<16x32xf32>, vector<8x32xf32> -> vector<8x32xf32>
    %137 = vector.broadcast %133 : vector<8x1xf32> to vector<8x32xf32>
    %138 = arith.mulf %137, %136 : vector<8x32xf32>
    %139 = arith.addf %127, %138 : vector<8x32xf32>
    %c7_i32 = arith.constant 7 : i32
    %140 = vector.broadcast %c7_i32 : i32 to vector<8x32xi32>
    %141 = arith.cmpi eq, %54, %140 : vector<8x32xi32>
    %cst_57 = arith.constant 0.000000e+00 : f32
    %142 = vector.broadcast %cst_57 : f32 to vector<8x32xf32>
    %143 = arith.select %141, %26, %142 : vector<8x32xi1>, vector<8x32xf32>
    %cst_58 = arith.constant dense<0.000000e+00> : vector<8xf32>
    %144 = vector.multi_reduction <add>, %143, %cst_58 [1] : vector<8x32xf32> to vector<8xf32>
    %145 = vector.shape_cast %144 : vector<8xf32> to vector<8x1xf32>
    %c7 = arith.constant 7 : index
    %c0_59 = arith.constant 0 : index
    %c0_60 = arith.constant 0 : index
    %146 = vector.load %arg6[%c7, %c0_59, %c0_60] : memref<32x16x32xf32, #tpu.memory_space<vmem>>, vector<1x16x32xf32>
    %147 = vector.shape_cast %146 : vector<1x16x32xf32> to vector<16x32xf32>
    %cst_61 = arith.constant dense<0.000000e+00> : vector<8x32xf32>
    %148 = tpu.matmul %53, %147, %cst_61 {dimension_numbers = #tpu.dot_dimension_numbers<[1], [0], [0], [1], [0, 0, 1, 1], [], []>} : vector<8x16xf32>, vector<16x32xf32>, vector<8x32xf32> -> vector<8x32xf32>
    %149 = vector.broadcast %145 : vector<8x1xf32> to vector<8x32xf32>
    %150 = arith.mulf %149, %148 : vector<8x32xf32>
    %151 = arith.addf %139, %150 : vector<8x32xf32>
    %c8_i32 = arith.constant 8 : i32
    %152 = vector.broadcast %c8_i32 : i32 to vector<8x32xi32>
    %153 = arith.cmpi eq, %54, %152 : vector<8x32xi32>
    %cst_62 = arith.constant 0.000000e+00 : f32
    %154 = vector.broadcast %cst_62 : f32 to vector<8x32xf32>
    %155 = arith.select %153, %26, %154 : vector<8x32xi1>, vector<8x32xf32>
    %cst_63 = arith.constant dense<0.000000e+00> : vector<8xf32>
    %156 = vector.multi_reduction <add>, %155, %cst_63 [1] : vector<8x32xf32> to vector<8xf32>
    %157 = vector.shape_cast %156 : vector<8xf32> to vector<8x1xf32>
    %c8 = arith.constant 8 : index
    %c0_64 = arith.constant 0 : index
    %c0_65 = arith.constant 0 : index
    %158 = vector.load %arg6[%c8, %c0_64, %c0_65] : memref<32x16x32xf32, #tpu.memory_space<vmem>>, vector<1x16x32xf32>
    %159 = vector.shape_cast %158 : vector<1x16x32xf32> to vector<16x32xf32>
    %cst_66 = arith.constant dense<0.000000e+00> : vector<8x32xf32>
    %160 = tpu.matmul %53, %159, %cst_66 {dimension_numbers = #tpu.dot_dimension_numbers<[1], [0], [0], [1], [0, 0, 1, 1], [], []>} : vector<8x16xf32>, vector<16x32xf32>, vector<8x32xf32> -> vector<8x32xf32>
    %161 = vector.broadcast %157 : vector<8x1xf32> to vector<8x32xf32>
    %162 = arith.mulf %161, %160 : vector<8x32xf32>
    %163 = arith.addf %151, %162 : vector<8x32xf32>
    %c9_i32 = arith.constant 9 : i32
    %164 = vector.broadcast %c9_i32 : i32 to vector<8x32xi32>
    %165 = arith.cmpi eq, %54, %164 : vector<8x32xi32>
    %cst_67 = arith.constant 0.000000e+00 : f32
    %166 = vector.broadcast %cst_67 : f32 to vector<8x32xf32>
    %167 = arith.select %165, %26, %166 : vector<8x32xi1>, vector<8x32xf32>
    %cst_68 = arith.constant dense<0.000000e+00> : vector<8xf32>
    %168 = vector.multi_reduction <add>, %167, %cst_68 [1] : vector<8x32xf32> to vector<8xf32>
    %169 = vector.shape_cast %168 : vector<8xf32> to vector<8x1xf32>
    %c9 = arith.constant 9 : index
    %c0_69 = arith.constant 0 : index
    %c0_70 = arith.constant 0 : index
    %170 = vector.load %arg6[%c9, %c0_69, %c0_70] : memref<32x16x32xf32, #tpu.memory_space<vmem>>, vector<1x16x32xf32>
    %171 = vector.shape_cast %170 : vector<1x16x32xf32> to vector<16x32xf32>
    %cst_71 = arith.constant dense<0.000000e+00> : vector<8x32xf32>
    %172 = tpu.matmul %53, %171, %cst_71 {dimension_numbers = #tpu.dot_dimension_numbers<[1], [0], [0], [1], [0, 0, 1, 1], [], []>} : vector<8x16xf32>, vector<16x32xf32>, vector<8x32xf32> -> vector<8x32xf32>
    %173 = vector.broadcast %169 : vector<8x1xf32> to vector<8x32xf32>
    %174 = arith.mulf %173, %172 : vector<8x32xf32>
    %175 = arith.addf %163, %174 : vector<8x32xf32>
    %c10_i32 = arith.constant 10 : i32
    %176 = vector.broadcast %c10_i32 : i32 to vector<8x32xi32>
    %177 = arith.cmpi eq, %54, %176 : vector<8x32xi32>
    %cst_72 = arith.constant 0.000000e+00 : f32
    %178 = vector.broadcast %cst_72 : f32 to vector<8x32xf32>
    %179 = arith.select %177, %26, %178 : vector<8x32xi1>, vector<8x32xf32>
    %cst_73 = arith.constant dense<0.000000e+00> : vector<8xf32>
    %180 = vector.multi_reduction <add>, %179, %cst_73 [1] : vector<8x32xf32> to vector<8xf32>
    %181 = vector.shape_cast %180 : vector<8xf32> to vector<8x1xf32>
    %c10 = arith.constant 10 : index
    %c0_74 = arith.constant 0 : index
    %c0_75 = arith.constant 0 : index
    %182 = vector.load %arg6[%c10, %c0_74, %c0_75] : memref<32x16x32xf32, #tpu.memory_space<vmem>>, vector<1x16x32xf32>
    %183 = vector.shape_cast %182 : vector<1x16x32xf32> to vector<16x32xf32>
    %cst_76 = arith.constant dense<0.000000e+00> : vector<8x32xf32>
    %184 = tpu.matmul %53, %183, %cst_76 {dimension_numbers = #tpu.dot_dimension_numbers<[1], [0], [0], [1], [0, 0, 1, 1], [], []>} : vector<8x16xf32>, vector<16x32xf32>, vector<8x32xf32> -> vector<8x32xf32>
    %185 = vector.broadcast %181 : vector<8x1xf32> to vector<8x32xf32>
    %186 = arith.mulf %185, %184 : vector<8x32xf32>
    %187 = arith.addf %175, %186 : vector<8x32xf32>
    %c11_i32 = arith.constant 11 : i32
    %188 = vector.broadcast %c11_i32 : i32 to vector<8x32xi32>
    %189 = arith.cmpi eq, %54, %188 : vector<8x32xi32>
    %cst_77 = arith.constant 0.000000e+00 : f32
    %190 = vector.broadcast %cst_77 : f32 to vector<8x32xf32>
    %191 = arith.select %189, %26, %190 : vector<8x32xi1>, vector<8x32xf32>
    %cst_78 = arith.constant dense<0.000000e+00> : vector<8xf32>
    %192 = vector.multi_reduction <add>, %191, %cst_78 [1] : vector<8x32xf32> to vector<8xf32>
    %193 = vector.shape_cast %192 : vector<8xf32> to vector<8x1xf32>
    %c11 = arith.constant 11 : index
    %c0_79 = arith.constant 0 : index
    %c0_80 = arith.constant 0 : index
    %194 = vector.load %arg6[%c11, %c0_79, %c0_80] : memref<32x16x32xf32, #tpu.memory_space<vmem>>, vector<1x16x32xf32>
    %195 = vector.shape_cast %194 : vector<1x16x32xf32> to vector<16x32xf32>
    %cst_81 = arith.constant dense<0.000000e+00> : vector<8x32xf32>
    %196 = tpu.matmul %53, %195, %cst_81 {dimension_numbers = #tpu.dot_dimension_numbers<[1], [0], [0], [1], [0, 0, 1, 1], [], []>} : vector<8x16xf32>, vector<16x32xf32>, vector<8x32xf32> -> vector<8x32xf32>
    %197 = vector.broadcast %193 : vector<8x1xf32> to vector<8x32xf32>
    %198 = arith.mulf %197, %196 : vector<8x32xf32>
    %199 = arith.addf %187, %198 : vector<8x32xf32>
    %c12_i32 = arith.constant 12 : i32
    %200 = vector.broadcast %c12_i32 : i32 to vector<8x32xi32>
    %201 = arith.cmpi eq, %54, %200 : vector<8x32xi32>
    %cst_82 = arith.constant 0.000000e+00 : f32
    %202 = vector.broadcast %cst_82 : f32 to vector<8x32xf32>
    %203 = arith.select %201, %26, %202 : vector<8x32xi1>, vector<8x32xf32>
    %cst_83 = arith.constant dense<0.000000e+00> : vector<8xf32>
    %204 = vector.multi_reduction <add>, %203, %cst_83 [1] : vector<8x32xf32> to vector<8xf32>
    %205 = vector.shape_cast %204 : vector<8xf32> to vector<8x1xf32>
    %c12 = arith.constant 12 : index
    %c0_84 = arith.constant 0 : index
    %c0_85 = arith.constant 0 : index
    %206 = vector.load %arg6[%c12, %c0_84, %c0_85] : memref<32x16x32xf32, #tpu.memory_space<vmem>>, vector<1x16x32xf32>
    %207 = vector.shape_cast %206 : vector<1x16x32xf32> to vector<16x32xf32>
    %cst_86 = arith.constant dense<0.000000e+00> : vector<8x32xf32>
    %208 = tpu.matmul %53, %207, %cst_86 {dimension_numbers = #tpu.dot_dimension_numbers<[1], [0], [0], [1], [0, 0, 1, 1], [], []>} : vector<8x16xf32>, vector<16x32xf32>, vector<8x32xf32> -> vector<8x32xf32>
    %209 = vector.broadcast %205 : vector<8x1xf32> to vector<8x32xf32>
    %210 = arith.mulf %209, %208 : vector<8x32xf32>
    %211 = arith.addf %199, %210 : vector<8x32xf32>
    %c13_i32 = arith.constant 13 : i32
    %212 = vector.broadcast %c13_i32 : i32 to vector<8x32xi32>
    %213 = arith.cmpi eq, %54, %212 : vector<8x32xi32>
    %cst_87 = arith.constant 0.000000e+00 : f32
    %214 = vector.broadcast %cst_87 : f32 to vector<8x32xf32>
    %215 = arith.select %213, %26, %214 : vector<8x32xi1>, vector<8x32xf32>
    %cst_88 = arith.constant dense<0.000000e+00> : vector<8xf32>
    %216 = vector.multi_reduction <add>, %215, %cst_88 [1] : vector<8x32xf32> to vector<8xf32>
    %217 = vector.shape_cast %216 : vector<8xf32> to vector<8x1xf32>
    %c13 = arith.constant 13 : index
    %c0_89 = arith.constant 0 : index
    %c0_90 = arith.constant 0 : index
    %218 = vector.load %arg6[%c13, %c0_89, %c0_90] : memref<32x16x32xf32, #tpu.memory_space<vmem>>, vector<1x16x32xf32>
    %219 = vector.shape_cast %218 : vector<1x16x32xf32> to vector<16x32xf32>
    %cst_91 = arith.constant dense<0.000000e+00> : vector<8x32xf32>
    %220 = tpu.matmul %53, %219, %cst_91 {dimension_numbers = #tpu.dot_dimension_numbers<[1], [0], [0], [1], [0, 0, 1, 1], [], []>} : vector<8x16xf32>, vector<16x32xf32>, vector<8x32xf32> -> vector<8x32xf32>
    %221 = vector.broadcast %217 : vector<8x1xf32> to vector<8x32xf32>
    %222 = arith.mulf %221, %220 : vector<8x32xf32>
    %223 = arith.addf %211, %222 : vector<8x32xf32>
    %c14_i32 = arith.constant 14 : i32
    %224 = vector.broadcast %c14_i32 : i32 to vector<8x32xi32>
    %225 = arith.cmpi eq, %54, %224 : vector<8x32xi32>
    %cst_92 = arith.constant 0.000000e+00 : f32
    %226 = vector.broadcast %cst_92 : f32 to vector<8x32xf32>
    %227 = arith.select %225, %26, %226 : vector<8x32xi1>, vector<8x32xf32>
    %cst_93 = arith.constant dense<0.000000e+00> : vector<8xf32>
    %228 = vector.multi_reduction <add>, %227, %cst_93 [1] : vector<8x32xf32> to vector<8xf32>
    %229 = vector.shape_cast %228 : vector<8xf32> to vector<8x1xf32>
    %c14 = arith.constant 14 : index
    %c0_94 = arith.constant 0 : index
    %c0_95 = arith.constant 0 : index
    %230 = vector.load %arg6[%c14, %c0_94, %c0_95] : memref<32x16x32xf32, #tpu.memory_space<vmem>>, vector<1x16x32xf32>
    %231 = vector.shape_cast %230 : vector<1x16x32xf32> to vector<16x32xf32>
    %cst_96 = arith.constant dense<0.000000e+00> : vector<8x32xf32>
    %232 = tpu.matmul %53, %231, %cst_96 {dimension_numbers = #tpu.dot_dimension_numbers<[1], [0], [0], [1], [0, 0, 1, 1], [], []>} : vector<8x16xf32>, vector<16x32xf32>, vector<8x32xf32> -> vector<8x32xf32>
    %233 = vector.broadcast %229 : vector<8x1xf32> to vector<8x32xf32>
    %234 = arith.mulf %233, %232 : vector<8x32xf32>
    %235 = arith.addf %223, %234 : vector<8x32xf32>
    %c15_i32 = arith.constant 15 : i32
    %236 = vector.broadcast %c15_i32 : i32 to vector<8x32xi32>
    %237 = arith.cmpi eq, %54, %236 : vector<8x32xi32>
    %cst_97 = arith.constant 0.000000e+00 : f32
    %238 = vector.broadcast %cst_97 : f32 to vector<8x32xf32>
    %239 = arith.select %237, %26, %238 : vector<8x32xi1>, vector<8x32xf32>
    %cst_98 = arith.constant dense<0.000000e+00> : vector<8xf32>
    %240 = vector.multi_reduction <add>, %239, %cst_98 [1] : vector<8x32xf32> to vector<8xf32>
    %241 = vector.shape_cast %240 : vector<8xf32> to vector<8x1xf32>
    %c15 = arith.constant 15 : index
    %c0_99 = arith.constant 0 : index
    %c0_100 = arith.constant 0 : index
    %242 = vector.load %arg6[%c15, %c0_99, %c0_100] : memref<32x16x32xf32, #tpu.memory_space<vmem>>, vector<1x16x32xf32>
    %243 = vector.shape_cast %242 : vector<1x16x32xf32> to vector<16x32xf32>
    %cst_101 = arith.constant dense<0.000000e+00> : vector<8x32xf32>
    %244 = tpu.matmul %53, %243, %cst_101 {dimension_numbers = #tpu.dot_dimension_numbers<[1], [0], [0], [1], [0, 0, 1, 1], [], []>} : vector<8x16xf32>, vector<16x32xf32>, vector<8x32xf32> -> vector<8x32xf32>
    %245 = vector.broadcast %241 : vector<8x1xf32> to vector<8x32xf32>
    %246 = arith.mulf %245, %244 : vector<8x32xf32>
    %247 = arith.addf %235, %246 : vector<8x32xf32>
    %c16_i32 = arith.constant 16 : i32
    %248 = vector.broadcast %c16_i32 : i32 to vector<8x32xi32>
    %249 = arith.cmpi eq, %54, %248 : vector<8x32xi32>
    %cst_102 = arith.constant 0.000000e+00 : f32
    %250 = vector.broadcast %cst_102 : f32 to vector<8x32xf32>
    %251 = arith.select %249, %26, %250 : vector<8x32xi1>, vector<8x32xf32>
    %cst_103 = arith.constant dense<0.000000e+00> : vector<8xf32>
    %252 = vector.multi_reduction <add>, %251, %cst_103 [1] : vector<8x32xf32> to vector<8xf32>
    %253 = vector.shape_cast %252 : vector<8xf32> to vector<8x1xf32>
    %c16 = arith.constant 16 : index
    %c0_104 = arith.constant 0 : index
    %c0_105 = arith.constant 0 : index
    %254 = vector.load %arg6[%c16, %c0_104, %c0_105] : memref<32x16x32xf32, #tpu.memory_space<vmem>>, vector<1x16x32xf32>
    %255 = vector.shape_cast %254 : vector<1x16x32xf32> to vector<16x32xf32>
    %cst_106 = arith.constant dense<0.000000e+00> : vector<8x32xf32>
    %256 = tpu.matmul %53, %255, %cst_106 {dimension_numbers = #tpu.dot_dimension_numbers<[1], [0], [0], [1], [0, 0, 1, 1], [], []>} : vector<8x16xf32>, vector<16x32xf32>, vector<8x32xf32> -> vector<8x32xf32>
    %257 = vector.broadcast %253 : vector<8x1xf32> to vector<8x32xf32>
    %258 = arith.mulf %257, %256 : vector<8x32xf32>
    %259 = arith.addf %247, %258 : vector<8x32xf32>
    %c17_i32 = arith.constant 17 : i32
    %260 = vector.broadcast %c17_i32 : i32 to vector<8x32xi32>
    %261 = arith.cmpi eq, %54, %260 : vector<8x32xi32>
    %cst_107 = arith.constant 0.000000e+00 : f32
    %262 = vector.broadcast %cst_107 : f32 to vector<8x32xf32>
    %263 = arith.select %261, %26, %262 : vector<8x32xi1>, vector<8x32xf32>
    %cst_108 = arith.constant dense<0.000000e+00> : vector<8xf32>
    %264 = vector.multi_reduction <add>, %263, %cst_108 [1] : vector<8x32xf32> to vector<8xf32>
    %265 = vector.shape_cast %264 : vector<8xf32> to vector<8x1xf32>
    %c17 = arith.constant 17 : index
    %c0_109 = arith.constant 0 : index
    %c0_110 = arith.constant 0 : index
    %266 = vector.load %arg6[%c17, %c0_109, %c0_110] : memref<32x16x32xf32, #tpu.memory_space<vmem>>, vector<1x16x32xf32>
    %267 = vector.shape_cast %266 : vector<1x16x32xf32> to vector<16x32xf32>
    %cst_111 = arith.constant dense<0.000000e+00> : vector<8x32xf32>
    %268 = tpu.matmul %53, %267, %cst_111 {dimension_numbers = #tpu.dot_dimension_numbers<[1], [0], [0], [1], [0, 0, 1, 1], [], []>} : vector<8x16xf32>, vector<16x32xf32>, vector<8x32xf32> -> vector<8x32xf32>
    %269 = vector.broadcast %265 : vector<8x1xf32> to vector<8x32xf32>
    %270 = arith.mulf %269, %268 : vector<8x32xf32>
    %271 = arith.addf %259, %270 : vector<8x32xf32>
    %c18_i32 = arith.constant 18 : i32
    %272 = vector.broadcast %c18_i32 : i32 to vector<8x32xi32>
    %273 = arith.cmpi eq, %54, %272 : vector<8x32xi32>
    %cst_112 = arith.constant 0.000000e+00 : f32
    %274 = vector.broadcast %cst_112 : f32 to vector<8x32xf32>
    %275 = arith.select %273, %26, %274 : vector<8x32xi1>, vector<8x32xf32>
    %cst_113 = arith.constant dense<0.000000e+00> : vector<8xf32>
    %276 = vector.multi_reduction <add>, %275, %cst_113 [1] : vector<8x32xf32> to vector<8xf32>
    %277 = vector.shape_cast %276 : vector<8xf32> to vector<8x1xf32>
    %c18 = arith.constant 18 : index
    %c0_114 = arith.constant 0 : index
    %c0_115 = arith.constant 0 : index
    %278 = vector.load %arg6[%c18, %c0_114, %c0_115] : memref<32x16x32xf32, #tpu.memory_space<vmem>>, vector<1x16x32xf32>
    %279 = vector.shape_cast %278 : vector<1x16x32xf32> to vector<16x32xf32>
    %cst_116 = arith.constant dense<0.000000e+00> : vector<8x32xf32>
    %280 = tpu.matmul %53, %279, %cst_116 {dimension_numbers = #tpu.dot_dimension_numbers<[1], [0], [0], [1], [0, 0, 1, 1], [], []>} : vector<8x16xf32>, vector<16x32xf32>, vector<8x32xf32> -> vector<8x32xf32>
    %281 = vector.broadcast %277 : vector<8x1xf32> to vector<8x32xf32>
    %282 = arith.mulf %281, %280 : vector<8x32xf32>
    %283 = arith.addf %271, %282 : vector<8x32xf32>
    %c19_i32 = arith.constant 19 : i32
    %284 = vector.broadcast %c19_i32 : i32 to vector<8x32xi32>
    %285 = arith.cmpi eq, %54, %284 : vector<8x32xi32>
    %cst_117 = arith.constant 0.000000e+00 : f32
    %286 = vector.broadcast %cst_117 : f32 to vector<8x32xf32>
    %287 = arith.select %285, %26, %286 : vector<8x32xi1>, vector<8x32xf32>
    %cst_118 = arith.constant dense<0.000000e+00> : vector<8xf32>
    %288 = vector.multi_reduction <add>, %287, %cst_118 [1] : vector<8x32xf32> to vector<8xf32>
    %289 = vector.shape_cast %288 : vector<8xf32> to vector<8x1xf32>
    %c19 = arith.constant 19 : index
    %c0_119 = arith.constant 0 : index
    %c0_120 = arith.constant 0 : index
    %290 = vector.load %arg6[%c19, %c0_119, %c0_120] : memref<32x16x32xf32, #tpu.memory_space<vmem>>, vector<1x16x32xf32>
    %291 = vector.shape_cast %290 : vector<1x16x32xf32> to vector<16x32xf32>
    %cst_121 = arith.constant dense<0.000000e+00> : vector<8x32xf32>
    %292 = tpu.matmul %53, %291, %cst_121 {dimension_numbers = #tpu.dot_dimension_numbers<[1], [0], [0], [1], [0, 0, 1, 1], [], []>} : vector<8x16xf32>, vector<16x32xf32>, vector<8x32xf32> -> vector<8x32xf32>
    %293 = vector.broadcast %289 : vector<8x1xf32> to vector<8x32xf32>
    %294 = arith.mulf %293, %292 : vector<8x32xf32>
    %295 = arith.addf %283, %294 : vector<8x32xf32>
    %c20_i32 = arith.constant 20 : i32
    %296 = vector.broadcast %c20_i32 : i32 to vector<8x32xi32>
    %297 = arith.cmpi eq, %54, %296 : vector<8x32xi32>
    %cst_122 = arith.constant 0.000000e+00 : f32
    %298 = vector.broadcast %cst_122 : f32 to vector<8x32xf32>
    %299 = arith.select %297, %26, %298 : vector<8x32xi1>, vector<8x32xf32>
    %cst_123 = arith.constant dense<0.000000e+00> : vector<8xf32>
    %300 = vector.multi_reduction <add>, %299, %cst_123 [1] : vector<8x32xf32> to vector<8xf32>
    %301 = vector.shape_cast %300 : vector<8xf32> to vector<8x1xf32>
    %c20 = arith.constant 20 : index
    %c0_124 = arith.constant 0 : index
    %c0_125 = arith.constant 0 : index
    %302 = vector.load %arg6[%c20, %c0_124, %c0_125] : memref<32x16x32xf32, #tpu.memory_space<vmem>>, vector<1x16x32xf32>
    %303 = vector.shape_cast %302 : vector<1x16x32xf32> to vector<16x32xf32>
    %cst_126 = arith.constant dense<0.000000e+00> : vector<8x32xf32>
    %304 = tpu.matmul %53, %303, %cst_126 {dimension_numbers = #tpu.dot_dimension_numbers<[1], [0], [0], [1], [0, 0, 1, 1], [], []>} : vector<8x16xf32>, vector<16x32xf32>, vector<8x32xf32> -> vector<8x32xf32>
    %305 = vector.broadcast %301 : vector<8x1xf32> to vector<8x32xf32>
    %306 = arith.mulf %305, %304 : vector<8x32xf32>
    %307 = arith.addf %295, %306 : vector<8x32xf32>
    %c21_i32 = arith.constant 21 : i32
    %308 = vector.broadcast %c21_i32 : i32 to vector<8x32xi32>
    %309 = arith.cmpi eq, %54, %308 : vector<8x32xi32>
    %cst_127 = arith.constant 0.000000e+00 : f32
    %310 = vector.broadcast %cst_127 : f32 to vector<8x32xf32>
    %311 = arith.select %309, %26, %310 : vector<8x32xi1>, vector<8x32xf32>
    %cst_128 = arith.constant dense<0.000000e+00> : vector<8xf32>
    %312 = vector.multi_reduction <add>, %311, %cst_128 [1] : vector<8x32xf32> to vector<8xf32>
    %313 = vector.shape_cast %312 : vector<8xf32> to vector<8x1xf32>
    %c21 = arith.constant 21 : index
    %c0_129 = arith.constant 0 : index
    %c0_130 = arith.constant 0 : index
    %314 = vector.load %arg6[%c21, %c0_129, %c0_130] : memref<32x16x32xf32, #tpu.memory_space<vmem>>, vector<1x16x32xf32>
    %315 = vector.shape_cast %314 : vector<1x16x32xf32> to vector<16x32xf32>
    %cst_131 = arith.constant dense<0.000000e+00> : vector<8x32xf32>
    %316 = tpu.matmul %53, %315, %cst_131 {dimension_numbers = #tpu.dot_dimension_numbers<[1], [0], [0], [1], [0, 0, 1, 1], [], []>} : vector<8x16xf32>, vector<16x32xf32>, vector<8x32xf32> -> vector<8x32xf32>
    %317 = vector.broadcast %313 : vector<8x1xf32> to vector<8x32xf32>
    %318 = arith.mulf %317, %316 : vector<8x32xf32>
    %319 = arith.addf %307, %318 : vector<8x32xf32>
    %c22_i32 = arith.constant 22 : i32
    %320 = vector.broadcast %c22_i32 : i32 to vector<8x32xi32>
    %321 = arith.cmpi eq, %54, %320 : vector<8x32xi32>
    %cst_132 = arith.constant 0.000000e+00 : f32
    %322 = vector.broadcast %cst_132 : f32 to vector<8x32xf32>
    %323 = arith.select %321, %26, %322 : vector<8x32xi1>, vector<8x32xf32>
    %cst_133 = arith.constant dense<0.000000e+00> : vector<8xf32>
    %324 = vector.multi_reduction <add>, %323, %cst_133 [1] : vector<8x32xf32> to vector<8xf32>
    %325 = vector.shape_cast %324 : vector<8xf32> to vector<8x1xf32>
    %c22 = arith.constant 22 : index
    %c0_134 = arith.constant 0 : index
    %c0_135 = arith.constant 0 : index
    %326 = vector.load %arg6[%c22, %c0_134, %c0_135] : memref<32x16x32xf32, #tpu.memory_space<vmem>>, vector<1x16x32xf32>
    %327 = vector.shape_cast %326 : vector<1x16x32xf32> to vector<16x32xf32>
    %cst_136 = arith.constant dense<0.000000e+00> : vector<8x32xf32>
    %328 = tpu.matmul %53, %327, %cst_136 {dimension_numbers = #tpu.dot_dimension_numbers<[1], [0], [0], [1], [0, 0, 1, 1], [], []>} : vector<8x16xf32>, vector<16x32xf32>, vector<8x32xf32> -> vector<8x32xf32>
    %329 = vector.broadcast %325 : vector<8x1xf32> to vector<8x32xf32>
    %330 = arith.mulf %329, %328 : vector<8x32xf32>
    %331 = arith.addf %319, %330 : vector<8x32xf32>
    %c23_i32 = arith.constant 23 : i32
    %332 = vector.broadcast %c23_i32 : i32 to vector<8x32xi32>
    %333 = arith.cmpi eq, %54, %332 : vector<8x32xi32>
    %cst_137 = arith.constant 0.000000e+00 : f32
    %334 = vector.broadcast %cst_137 : f32 to vector<8x32xf32>
    %335 = arith.select %333, %26, %334 : vector<8x32xi1>, vector<8x32xf32>
    %cst_138 = arith.constant dense<0.000000e+00> : vector<8xf32>
    %336 = vector.multi_reduction <add>, %335, %cst_138 [1] : vector<8x32xf32> to vector<8xf32>
    %337 = vector.shape_cast %336 : vector<8xf32> to vector<8x1xf32>
    %c23 = arith.constant 23 : index
    %c0_139 = arith.constant 0 : index
    %c0_140 = arith.constant 0 : index
    %338 = vector.load %arg6[%c23, %c0_139, %c0_140] : memref<32x16x32xf32, #tpu.memory_space<vmem>>, vector<1x16x32xf32>
    %339 = vector.shape_cast %338 : vector<1x16x32xf32> to vector<16x32xf32>
    %cst_141 = arith.constant dense<0.000000e+00> : vector<8x32xf32>
    %340 = tpu.matmul %53, %339, %cst_141 {dimension_numbers = #tpu.dot_dimension_numbers<[1], [0], [0], [1], [0, 0, 1, 1], [], []>} : vector<8x16xf32>, vector<16x32xf32>, vector<8x32xf32> -> vector<8x32xf32>
    %341 = vector.broadcast %337 : vector<8x1xf32> to vector<8x32xf32>
    %342 = arith.mulf %341, %340 : vector<8x32xf32>
    %343 = arith.addf %331, %342 : vector<8x32xf32>
    %c24_i32 = arith.constant 24 : i32
    %344 = vector.broadcast %c24_i32 : i32 to vector<8x32xi32>
    %345 = arith.cmpi eq, %54, %344 : vector<8x32xi32>
    %cst_142 = arith.constant 0.000000e+00 : f32
    %346 = vector.broadcast %cst_142 : f32 to vector<8x32xf32>
    %347 = arith.select %345, %26, %346 : vector<8x32xi1>, vector<8x32xf32>
    %cst_143 = arith.constant dense<0.000000e+00> : vector<8xf32>
    %348 = vector.multi_reduction <add>, %347, %cst_143 [1] : vector<8x32xf32> to vector<8xf32>
    %349 = vector.shape_cast %348 : vector<8xf32> to vector<8x1xf32>
    %c24 = arith.constant 24 : index
    %c0_144 = arith.constant 0 : index
    %c0_145 = arith.constant 0 : index
    %350 = vector.load %arg6[%c24, %c0_144, %c0_145] : memref<32x16x32xf32, #tpu.memory_space<vmem>>, vector<1x16x32xf32>
    %351 = vector.shape_cast %350 : vector<1x16x32xf32> to vector<16x32xf32>
    %cst_146 = arith.constant dense<0.000000e+00> : vector<8x32xf32>
    %352 = tpu.matmul %53, %351, %cst_146 {dimension_numbers = #tpu.dot_dimension_numbers<[1], [0], [0], [1], [0, 0, 1, 1], [], []>} : vector<8x16xf32>, vector<16x32xf32>, vector<8x32xf32> -> vector<8x32xf32>
    %353 = vector.broadcast %349 : vector<8x1xf32> to vector<8x32xf32>
    %354 = arith.mulf %353, %352 : vector<8x32xf32>
    %355 = arith.addf %343, %354 : vector<8x32xf32>
    %c25_i32 = arith.constant 25 : i32
    %356 = vector.broadcast %c25_i32 : i32 to vector<8x32xi32>
    %357 = arith.cmpi eq, %54, %356 : vector<8x32xi32>
    %cst_147 = arith.constant 0.000000e+00 : f32
    %358 = vector.broadcast %cst_147 : f32 to vector<8x32xf32>
    %359 = arith.select %357, %26, %358 : vector<8x32xi1>, vector<8x32xf32>
    %cst_148 = arith.constant dense<0.000000e+00> : vector<8xf32>
    %360 = vector.multi_reduction <add>, %359, %cst_148 [1] : vector<8x32xf32> to vector<8xf32>
    %361 = vector.shape_cast %360 : vector<8xf32> to vector<8x1xf32>
    %c25 = arith.constant 25 : index
    %c0_149 = arith.constant 0 : index
    %c0_150 = arith.constant 0 : index
    %362 = vector.load %arg6[%c25, %c0_149, %c0_150] : memref<32x16x32xf32, #tpu.memory_space<vmem>>, vector<1x16x32xf32>
    %363 = vector.shape_cast %362 : vector<1x16x32xf32> to vector<16x32xf32>
    %cst_151 = arith.constant dense<0.000000e+00> : vector<8x32xf32>
    %364 = tpu.matmul %53, %363, %cst_151 {dimension_numbers = #tpu.dot_dimension_numbers<[1], [0], [0], [1], [0, 0, 1, 1], [], []>} : vector<8x16xf32>, vector<16x32xf32>, vector<8x32xf32> -> vector<8x32xf32>
    %365 = vector.broadcast %361 : vector<8x1xf32> to vector<8x32xf32>
    %366 = arith.mulf %365, %364 : vector<8x32xf32>
    %367 = arith.addf %355, %366 : vector<8x32xf32>
    %c26_i32 = arith.constant 26 : i32
    %368 = vector.broadcast %c26_i32 : i32 to vector<8x32xi32>
    %369 = arith.cmpi eq, %54, %368 : vector<8x32xi32>
    %cst_152 = arith.constant 0.000000e+00 : f32
    %370 = vector.broadcast %cst_152 : f32 to vector<8x32xf32>
    %371 = arith.select %369, %26, %370 : vector<8x32xi1>, vector<8x32xf32>
    %cst_153 = arith.constant dense<0.000000e+00> : vector<8xf32>
    %372 = vector.multi_reduction <add>, %371, %cst_153 [1] : vector<8x32xf32> to vector<8xf32>
    %373 = vector.shape_cast %372 : vector<8xf32> to vector<8x1xf32>
    %c26 = arith.constant 26 : index
    %c0_154 = arith.constant 0 : index
    %c0_155 = arith.constant 0 : index
    %374 = vector.load %arg6[%c26, %c0_154, %c0_155] : memref<32x16x32xf32, #tpu.memory_space<vmem>>, vector<1x16x32xf32>
    %375 = vector.shape_cast %374 : vector<1x16x32xf32> to vector<16x32xf32>
    %cst_156 = arith.constant dense<0.000000e+00> : vector<8x32xf32>
    %376 = tpu.matmul %53, %375, %cst_156 {dimension_numbers = #tpu.dot_dimension_numbers<[1], [0], [0], [1], [0, 0, 1, 1], [], []>} : vector<8x16xf32>, vector<16x32xf32>, vector<8x32xf32> -> vector<8x32xf32>
    %377 = vector.broadcast %373 : vector<8x1xf32> to vector<8x32xf32>
    %378 = arith.mulf %377, %376 : vector<8x32xf32>
    %379 = arith.addf %367, %378 : vector<8x32xf32>
    %c27_i32 = arith.constant 27 : i32
    %380 = vector.broadcast %c27_i32 : i32 to vector<8x32xi32>
    %381 = arith.cmpi eq, %54, %380 : vector<8x32xi32>
    %cst_157 = arith.constant 0.000000e+00 : f32
    %382 = vector.broadcast %cst_157 : f32 to vector<8x32xf32>
    %383 = arith.select %381, %26, %382 : vector<8x32xi1>, vector<8x32xf32>
    %cst_158 = arith.constant dense<0.000000e+00> : vector<8xf32>
    %384 = vector.multi_reduction <add>, %383, %cst_158 [1] : vector<8x32xf32> to vector<8xf32>
    %385 = vector.shape_cast %384 : vector<8xf32> to vector<8x1xf32>
    %c27 = arith.constant 27 : index
    %c0_159 = arith.constant 0 : index
    %c0_160 = arith.constant 0 : index
    %386 = vector.load %arg6[%c27, %c0_159, %c0_160] : memref<32x16x32xf32, #tpu.memory_space<vmem>>, vector<1x16x32xf32>
    %387 = vector.shape_cast %386 : vector<1x16x32xf32> to vector<16x32xf32>
    %cst_161 = arith.constant dense<0.000000e+00> : vector<8x32xf32>
    %388 = tpu.matmul %53, %387, %cst_161 {dimension_numbers = #tpu.dot_dimension_numbers<[1], [0], [0], [1], [0, 0, 1, 1], [], []>} : vector<8x16xf32>, vector<16x32xf32>, vector<8x32xf32> -> vector<8x32xf32>
    %389 = vector.broadcast %385 : vector<8x1xf32> to vector<8x32xf32>
    %390 = arith.mulf %389, %388 : vector<8x32xf32>
    %391 = arith.addf %379, %390 : vector<8x32xf32>
    %c28_i32 = arith.constant 28 : i32
    %392 = vector.broadcast %c28_i32 : i32 to vector<8x32xi32>
    %393 = arith.cmpi eq, %54, %392 : vector<8x32xi32>
    %cst_162 = arith.constant 0.000000e+00 : f32
    %394 = vector.broadcast %cst_162 : f32 to vector<8x32xf32>
    %395 = arith.select %393, %26, %394 : vector<8x32xi1>, vector<8x32xf32>
    %cst_163 = arith.constant dense<0.000000e+00> : vector<8xf32>
    %396 = vector.multi_reduction <add>, %395, %cst_163 [1] : vector<8x32xf32> to vector<8xf32>
    %397 = vector.shape_cast %396 : vector<8xf32> to vector<8x1xf32>
    %c28 = arith.constant 28 : index
    %c0_164 = arith.constant 0 : index
    %c0_165 = arith.constant 0 : index
    %398 = vector.load %arg6[%c28, %c0_164, %c0_165] : memref<32x16x32xf32, #tpu.memory_space<vmem>>, vector<1x16x32xf32>
    %399 = vector.shape_cast %398 : vector<1x16x32xf32> to vector<16x32xf32>
    %cst_166 = arith.constant dense<0.000000e+00> : vector<8x32xf32>
    %400 = tpu.matmul %53, %399, %cst_166 {dimension_numbers = #tpu.dot_dimension_numbers<[1], [0], [0], [1], [0, 0, 1, 1], [], []>} : vector<8x16xf32>, vector<16x32xf32>, vector<8x32xf32> -> vector<8x32xf32>
    %401 = vector.broadcast %397 : vector<8x1xf32> to vector<8x32xf32>
    %402 = arith.mulf %401, %400 : vector<8x32xf32>
    %403 = arith.addf %391, %402 : vector<8x32xf32>
    %c29_i32 = arith.constant 29 : i32
    %404 = vector.broadcast %c29_i32 : i32 to vector<8x32xi32>
    %405 = arith.cmpi eq, %54, %404 : vector<8x32xi32>
    %cst_167 = arith.constant 0.000000e+00 : f32
    %406 = vector.broadcast %cst_167 : f32 to vector<8x32xf32>
    %407 = arith.select %405, %26, %406 : vector<8x32xi1>, vector<8x32xf32>
    %cst_168 = arith.constant dense<0.000000e+00> : vector<8xf32>
    %408 = vector.multi_reduction <add>, %407, %cst_168 [1] : vector<8x32xf32> to vector<8xf32>
    %409 = vector.shape_cast %408 : vector<8xf32> to vector<8x1xf32>
    %c29 = arith.constant 29 : index
    %c0_169 = arith.constant 0 : index
    %c0_170 = arith.constant 0 : index
    %410 = vector.load %arg6[%c29, %c0_169, %c0_170] : memref<32x16x32xf32, #tpu.memory_space<vmem>>, vector<1x16x32xf32>
    %411 = vector.shape_cast %410 : vector<1x16x32xf32> to vector<16x32xf32>
    %cst_171 = arith.constant dense<0.000000e+00> : vector<8x32xf32>
    %412 = tpu.matmul %53, %411, %cst_171 {dimension_numbers = #tpu.dot_dimension_numbers<[1], [0], [0], [1], [0, 0, 1, 1], [], []>} : vector<8x16xf32>, vector<16x32xf32>, vector<8x32xf32> -> vector<8x32xf32>
    %413 = vector.broadcast %409 : vector<8x1xf32> to vector<8x32xf32>
    %414 = arith.mulf %413, %412 : vector<8x32xf32>
    %415 = arith.addf %403, %414 : vector<8x32xf32>
    %c30_i32 = arith.constant 30 : i32
    %416 = vector.broadcast %c30_i32 : i32 to vector<8x32xi32>
    %417 = arith.cmpi eq, %54, %416 : vector<8x32xi32>
    %cst_172 = arith.constant 0.000000e+00 : f32
    %418 = vector.broadcast %cst_172 : f32 to vector<8x32xf32>
    %419 = arith.select %417, %26, %418 : vector<8x32xi1>, vector<8x32xf32>
    %cst_173 = arith.constant dense<0.000000e+00> : vector<8xf32>
    %420 = vector.multi_reduction <add>, %419, %cst_173 [1] : vector<8x32xf32> to vector<8xf32>
    %421 = vector.shape_cast %420 : vector<8xf32> to vector<8x1xf32>
    %c30 = arith.constant 30 : index
    %c0_174 = arith.constant 0 : index
    %c0_175 = arith.constant 0 : index
    %422 = vector.load %arg6[%c30, %c0_174, %c0_175] : memref<32x16x32xf32, #tpu.memory_space<vmem>>, vector<1x16x32xf32>
    %423 = vector.shape_cast %422 : vector<1x16x32xf32> to vector<16x32xf32>
    %cst_176 = arith.constant dense<0.000000e+00> : vector<8x32xf32>
    %424 = tpu.matmul %53, %423, %cst_176 {dimension_numbers = #tpu.dot_dimension_numbers<[1], [0], [0], [1], [0, 0, 1, 1], [], []>} : vector<8x16xf32>, vector<16x32xf32>, vector<8x32xf32> -> vector<8x32xf32>
    %425 = vector.broadcast %421 : vector<8x1xf32> to vector<8x32xf32>
    %426 = arith.mulf %425, %424 : vector<8x32xf32>
    %427 = arith.addf %415, %426 : vector<8x32xf32>
    %c31_i32 = arith.constant 31 : i32
    %428 = vector.broadcast %c31_i32 : i32 to vector<8x32xi32>
    %429 = arith.cmpi eq, %54, %428 : vector<8x32xi32>
    %cst_177 = arith.constant 0.000000e+00 : f32
    %430 = vector.broadcast %cst_177 : f32 to vector<8x32xf32>
    %431 = arith.select %429, %26, %430 : vector<8x32xi1>, vector<8x32xf32>
    %cst_178 = arith.constant dense<0.000000e+00> : vector<8xf32>
    %432 = vector.multi_reduction <add>, %431, %cst_178 [1] : vector<8x32xf32> to vector<8xf32>
    %433 = vector.shape_cast %432 : vector<8xf32> to vector<8x1xf32>
    %c31 = arith.constant 31 : index
    %c0_179 = arith.constant 0 : index
    %c0_180 = arith.constant 0 : index
    %434 = vector.load %arg6[%c31, %c0_179, %c0_180] : memref<32x16x32xf32, #tpu.memory_space<vmem>>, vector<1x16x32xf32>
    %435 = vector.shape_cast %434 : vector<1x16x32xf32> to vector<16x32xf32>
    %cst_181 = arith.constant dense<0.000000e+00> : vector<8x32xf32>
    %436 = tpu.matmul %53, %435, %cst_181 {dimension_numbers = #tpu.dot_dimension_numbers<[1], [0], [0], [1], [0, 0, 1, 1], [], []>} : vector<8x16xf32>, vector<16x32xf32>, vector<8x32xf32> -> vector<8x32xf32>
    %437 = vector.broadcast %433 : vector<8x1xf32> to vector<8x32xf32>
    %438 = arith.mulf %437, %436 : vector<8x32xf32>
    %439 = arith.addf %427, %438 : vector<8x32xf32>
    %c0_182 = arith.constant 0 : index
    %c0_183 = arith.constant 0 : index
    %440 = vector.load %arg7[%c0_182, %c0_183] : memref<8x32xf32, #tpu.memory_space<vmem>>, vector<8x32xf32>
    tpu.vector_store %arg7[%c0_182, %c0_183], %439 {strides = array<i32>} : memref<8x32xf32, #tpu.memory_space<vmem>>, vector<8x32xf32>,
    return
  }
}

</mosaic_0001>

<bundles_post_ra>
// kernel: tpu_custom_call.1
= control target key start
LH: loop header
LB: loop body
LE: loop exit
PB: predicated region body
PF: predicated region fallthrough
CT: control target
= control target key end

     0   :  { %12 = vsyncpa [#allocation3], 0  ;;  %s3664_s0 = inlined_call_operand.hbm [shape: f32[8,32], index: 0, kind: input, shape index: {}]   ;;  %s3665_s1 = inlined_call_operand.hbm [shape: f32[8,16], index: 1, kind: input, shape index: {}]   ;;  %s3666_s2 = inlined_call_operand.vmem [shape: f32[1,32], index: 2, kind: input, shape index: {}]   ;;  %s3667_s3 = inlined_call_operand.vmem [shape: f32[1,32], index: 3, kind: input, shape index: {}]   ;;  %s3668_s4 = inlined_call_operand.vmem [shape: f32[1,16], index: 4, kind: input, shape index: {}]   ;;  %s3669_s5 = inlined_call_operand.vmem [shape: f32[1,16], index: 5, kind: input, shape index: {}]   ;;  %s3670_s6 = inlined_call_operand.hbm [shape: f32[32,16,32], index: 6, kind: input, shape index: {}]   ;;  %s3671_s7 = inlined_call_operand.hbm [shape: f32[8,32], index: 7, kind: output, shape index: {}]  }
   0x1   :  { %13 = vsyncpa [#allocation6], 0 }
   0x2   :  { %14 = vsyncpa [#allocation4], 0  ;;  %s3283_s24 = smov [#allocation5]   ;;  %s3284_s26 = smov [#allocation2]  }
   0x3   :  { %s31_s25 = sshll.u32 %s3283_s24, 4  ;;  %s21_s27 = sshll.u32 %s3284_s26, 4  ;;  %s32_s25 = int_to_ptr.vmem [resolvable:$true] %s31_s25  ;;  %s22_s27 = int_to_ptr.vmem [resolvable:$true] %s21_s27 }
   0x4   :  { %s3189_s30 = scalar_lea.hbm %s3665_s1, 128 }
   0x5   :  { %p3190_p0 = scmp.ne.s32.totalorder %s3665_s1, %s3189_s30  ;;  %p3193_p1 = scmp.lt.u32.totalorder %s3189_s30, %s3665_s1 }
   0x7   :  { %p3195_p2 = pnand %p3193_p1, %p3190_p0 }
   0x9   :  { %3198 = shalt.err (!%p3195_p2)
}
   0xa   :  { %s3199_s12 = scalar_lea.vmem %s32_s25, 128  ;;  %p3204_p4 = scmp.lt.s32.totalorder %s32_s25, %s32_s25 }
   0xb   :  { %p3200_p3 = scmp.ne.s32.totalorder %s32_s25, %s3199_s12  ;;  %p3205_p5 = scmp.lt.s32.totalorder %s3199_s12, %s3199_s12 }
   0xd   :  { %p3206_p6 = por %p3205_p5, %p3204_p4 }
   0xf   :  { %p3207_p7 = pnand %p3206_p6, %p3200_p3 }
  0x11   :  { %3210 = shalt.err (!%p3207_p7)
}
  0x12   :  { %34 = dma.hbm_to_vmem [thread:$0]  %s3665_s1, 128, %s32_s25, [#allocation6]  }
  0x13   :  { %s3211_s17 = scalar_lea.hbm %s3664_s0, 128 }
  0x14   :  { %p3212_p8 = scmp.ne.s32.totalorder %s3664_s0, %s3211_s17  ;;  %p3215_p9 = scmp.lt.u32.totalorder %s3211_s17, %s3664_s0 }
  0x16   :  { %p3217_p10 = pnand %p3215_p9, %p3212_p8 }
  0x18   :  { %3220 = shalt.err (!%p3217_p10)
}
  0x19   :  { %s3221_s22 = scalar_lea.vmem %s22_s27, 128  ;;  %p3226_p12 = scmp.lt.s32.totalorder %s22_s27, %s22_s27 }
  0x1a   :  { %p3222_p11 = scmp.ne.s32.totalorder %s22_s27, %s3221_s22  ;;  %p3227_p13 = scmp.lt.s32.totalorder %s3221_s22, %s3221_s22 }
  0x1c   :  { %p3228_p0 = por %p3227_p13, %p3226_p12 }
  0x1e   :  { %p3229_p1 = pnand %p3228_p0, %p3222_p11 }
  0x20   :  { %3232 = shalt.err (!%p3229_p1)
}
  0x21   :  { %24 = dma.hbm_to_vmem [thread:$0]  %s3664_s0, 128, %s22_s27, [#allocation3]  }
  0x22   :  { %s3285_s24 = smov [#allocation7]   ;;  %s3233_s29 = scalar_lea.hbm %s3670_s6, 8192 }
  0x23   :  { %s48_s25 = sshll.u32 %s3285_s24, 4  ;;  %p3234_p2 = scmp.ne.s32.totalorder %s3670_s6, %s3233_s29  ;;  %s49_s25 = int_to_ptr.vmem [resolvable:$true] %s48_s25 }
  0x24   :  { %p3237_p3 = scmp.lt.u32.totalorder %s3233_s29, %s3670_s6 }
  0x26   :  { %p3239_p4 = pnand %p3237_p3, %p3234_p2 }
  0x28   :  { %3242 = shalt.err (!%p3239_p4)
}
  0x29   :  { %s3243_s11 = scalar_lea.vmem %s49_s25, 8192  ;;  %p3248_p6 = scmp.lt.s32.totalorder %s49_s25, %s49_s25 }
  0x2a   :  { %p3244_p5 = scmp.ne.s32.totalorder %s49_s25, %s3243_s11  ;;  %p3249_p7 = scmp.lt.s32.totalorder %s3243_s11, %s3243_s11 }
  0x2c   :  { %p3250_p8 = por %p3249_p7, %p3248_p6 }
  0x2e   :  { %p3251_p9 = pnand %p3250_p8, %p3244_p5 }
  0x30   :  { %3254 = shalt.err (!%p3251_p9)
}
  0x31   :  { %s3286_s0 = smov 128   ;;  %s3287_s27 = smov 8  }
  0x32   :  { %54 = dma.hbm_to_vmem [thread:$0]  %s3670_s6, 8192, %s49_s25, [#allocation6], %s3286_s0, %s3286_s0, %s3287_s27  }
  0x33   :  { %3277 = dma.done.wait [#allocation3], 128  }
  0x34   :  { %3278 = vsyncadd [#allocation3], 4294967168 }
  0x35   :  { %3279 = dma.done.wait [#allocation6], 8320  }
  0x36   :  { %3280 = vsyncadd [#allocation6], 4294958976  ;;  %v3288_v0 = vmov 0.0|0.0   ;;  %vm3289_vm0 = vmmov 0   ;;  %v3290_v1 = vmov 0.0   ;;  %vm107_vm1 = vcmask 130048  }
  0x37   :  { %3080 = vmatprep.subr.bf16.mxu0 %v3288_v0  ;;  %3083 = vmatprep.subr.bf16.mxu1 %v3288_v0  ;;  %v150_v2 = vld [vmem:[#allocation7] sm:$0xff]  ;;  %v151_v3 = vld [vmem:[#allocation7 + $0x8] sm:$0xff]  ;;  %v233_v4 = vld [vmem:[#allocation7 + $0x10] sm:$0xff]  ;;  %vm67_vm2 = vcmask 261120  }
  0x38   :  { %2860 = vmatprep.mubr.msk.f32.mxu0 %vm3289_vm0, %v3290_v1  ;;  %2867 = vmatprep.mubr.msk.f32.mxu1 %vm3289_vm0, %v3290_v1  ;;  %v3081_v5 = vpack.c.bf16 %v151_v3, %v150_v2  ;;  %v234_v6 = vld [vmem:[#allocation7 + $0x18] sm:$0xff]  ;;  %v64_v21 = vld [vmem:[#allocation2] sm:$0xff]  ;;  %v313_v41 = vld [vmem:[#allocation7 + $0x20] sm:$0xff] }
  0x39   :  { %v104_v7 = vld [vmem:[#allocation5] sm:$0xff]  ;;  %v3084_v8 = vpack.c.bf16 %v234_v6, %v233_v4  ;;  %v68_v22 = vsel %vm67_vm2, %v64_v21, 0.0  ;;  %v2726_v40 = vld [vmem:[%s3668_s4] ss:$0 sm:$0xff]  ;;  %v314_v44 = vld [vmem:[#allocation7 + $0x28] sm:$0xff] }
  0x3a   :  { %v108_v9 = vsel %vm107_vm1, %v104_v7, 0.0  ;;  %3082 = vmatpush3.bf16.msra.mxu0 %v3081_v5  ;;  %v69_v24 = vrot.slane %v68_v22, 4  ;;  %v393_v45 = vld [vmem:[#allocation7 + $0x30] sm:$0xff]  ;;  %v394_v46 = vld [vmem:[#allocation7 + $0x38] sm:$0xff]  ;;  %v3087_v50 = vpack.c.bf16 %v314_v44, %v313_v41  ;;  %v473_v52 = vld [vmem:[#allocation7 + $0x40] sm:$0xff] }
  0x3b   :  { %v109_v10 = vrot.slane %v108_v9, 4  ;;  %3085 = vmatpush3.bf16.msra.mxu1 %v3084_v8  ;;  %3086 = vmatprep.subr.bf16.mxu0 %v3288_v0  ;;  %v2727_v47 = vld [vmem:[%s3669_s5] ss:$0 sm:$0xff]  ;;  %v3090_v51 = vpack.c.bf16 %v394_v46, %v393_v45  ;;  %v474_v54 = vld [vmem:[#allocation7 + $0x48] sm:$0xff]  ;;  %v554_v56 = vld [vmem:[#allocation7 + $0x58] sm:$0xff] }
  0x3c   :  { %3089 = vmatprep.subr.bf16.mxu1 %v3288_v0  ;;  %v70_v26 = vadd.f32 %v69_v24, %v68_v22  ;;  %v553_v55 = vld [vmem:[#allocation7 + $0x50] sm:$0xff]  ;;  %v3093_v58 = vpack.c.bf16 %v474_v54, %v473_v52  ;;  %v633_v60 = vld [vmem:[#allocation7 + $0x60] sm:$0xff]  ;;  %v634_v61 = vld [vmem:[#allocation7 + $0x68] sm:$0xff] }
  0x3d   :  { %v110_v11 = vadd.f32 %v109_v10, %v108_v9  ;;  %v3096_v59 = vpack.c.bf16 %v554_v56, %v553_v55  ;;  %v713_v62 = vld [vmem:[#allocation7 + $0x70] sm:$0xff]  ;;  %v714_v63 = vld [vmem:[#allocation7 + $0x78] sm:$0xff]  ;;  %v3099_v3 = vpack.c.bf16 %v634_v61, %v633_v60  ;;  %v793_v5 = vld [vmem:[#allocation7 + $0x80] sm:$0xff] }
  0x3e   :  { %v71_v28 = vrot.slane %v70_v26, 2  ;;  %v3102_v4 = vpack.c.bf16 %v714_v63, %v713_v62  ;;  %v794_v6 = vld [vmem:[#allocation7 + $0x88] sm:$0xff]  ;;  %v874_v8 = vld [vmem:[#allocation7 + $0x98] sm:$0xff]  ;;  %v1593_v41 = vld [vmem:[#allocation7 + $0x120] sm:$0xff] }
  0x3f   :  { %v111_v12 = vrot.slane %v110_v11, 2  ;;  %v3105_v10 = vpack.c.bf16 %v794_v6, %v793_v5  ;;  %v1194_v22 = vld [vmem:[#allocation7 + $0xd8] sm:$0xff]  ;;  %v1913_v54 = vld [vmem:[#allocation7 + $0x160] sm:$0xff]  ;;  %v1914_v55 = vld [vmem:[#allocation7 + $0x168] sm:$0xff] }
  0x40   :  { %v72_v30 = vadd.f32 %v71_v28, %v70_v26  ;;  %v1273_v26 = vld [vmem:[#allocation7 + $0xe0] sm:$0xff]  ;;  %v1353_v28 = vld [vmem:[#allocation7 + $0xf0] sm:$0xff]  ;;  %v1674_v44 = vld [vmem:[#allocation7 + $0x138] sm:$0xff] }
  0x41   :  { %v112_v13 = vadd.f32 %v111_v12, %v110_v11  ;;  %v953_v12 = vld [vmem:[#allocation7 + $0xa0] sm:$0xff]  ;;  %v1993_v56 = vld [vmem:[#allocation7 + $0x170] sm:$0xff]  ;;  %v2074_v62 = vld [vmem:[#allocation7 + $0x188] sm:$0xff] }
  0x42   :  { %v73_v32 = vrot.slane %v72_v30, 1  ;;  %v2073_v60 = vld [vmem:[#allocation7 + $0x180] sm:$0xff]  ;;  %v2153_v63 = vld [vmem:[#allocation7 + $0x190] sm:$0xff]  ;;  %v2234_v6 = vld [vmem:[#allocation7 + $0x1a8] sm:$0xff] }
  0x43   :  { %v113_v14 = vrot.slane %v112_v13, 1  ;;  %v2233_v5 = vld [vmem:[#allocation7 + $0x1a0] sm:$0xff] }
  0x44   :  { %v74_v34 = vadd.f32 %v73_v32, %v72_v30 }
  0x45   :  { %v114_v15 = vadd.f32 %v113_v14, %v112_v13  ;;  %v954_v13 = vld [vmem:[#allocation7 + $0xa8] sm:$0xff]  ;;  %v1033_v14 = vld [vmem:[#allocation7 + $0xb0] sm:$0xff] }
  0x46   :  { %v76_v36 = vmul.f32 0.125, %v74_v34  ;;  %v1434_v34 = vld [vmem:[#allocation7 + $0x108] sm:$0xff] }
  0x47   :  { %v115_v16 = vmul.f32 0.125, %v114_v15  ;;  %v1034_v15 = vld [vmem:[#allocation7 + $0xb8] sm:$0xff] }
  0x48   :  { %v3379_v37 = vsub.f32 %v64_v21, %v76_v36  ;;  %v1193_v21 = vld [vmem:[#allocation7 + $0xd0] sm:$0xff]  ;;  %v1514_v36 = vld [vmem:[#allocation7 + $0x118] sm:$0xff] }
  0x49   :  { %v116_v17 = vsub.f32 %v104_v7, %v115_v16  ;;  %v873_v7 = vld [vmem:[#allocation7 + $0x90] sm:$0xff] }
  0x4a   :  { %v78_v38 = vmul.f32 %v3379_v37, %v3379_v37  ;;  %v3108_v11 = vpack.c.bf16 %v874_v8, %v873_v7  ;;  %v2313_v8 = vld [vmem:[#allocation7 + $0x1b0] sm:$0xff] }
  0x4b   :  { %v117_v18 = vmul.f32 %v116_v17, %v116_v17 }
  0x4c   :  { %v79_v42 = vsel %vm67_vm2, %v78_v38, 0.0 }
  0x4d   :  { %v118_v19 = vsel %vm107_vm1, %v117_v18, 0.0  ;;  %v80_v49 = vrot.slane %v79_v42, 4  ;;  %v3114_v18 = vpack.c.bf16 %v1034_v15, %v1033_v14  ;;  %v2394_v14 = vld [vmem:[#allocation7 + $0x1c8] sm:$0xff] }
  0x4e   :  { %v119_v20 = vrot.slane %v118_v19, 4 }
  0x4f   :  { %v81_v57 = vadd.f32 %v80_v49, %v79_v42  ;;  %v1594_v42 = vld [vmem:[#allocation7 + $0x128] sm:$0xff]  ;;  %v1833_v49 = vld [vmem:[#allocation7 + $0x150] sm:$0xff] }
  0x50   :  { %v120_v23 = vadd.f32 %v119_v20, %v118_v19  ;;  %v1113_v19 = vld [vmem:[#allocation7 + $0xc0] sm:$0xff]  ;;  %v1114_v20 = vld [vmem:[#allocation7 + $0xc8] sm:$0xff]  ;;  %v3135_v45 = vpack.c.bf16 %v1594_v42, %v1593_v41 }
  0x51   :  { %v82_v2 = vrot.slane %v81_v57, 2  ;;  %v3117_v24 = vpack.c.bf16 %v1114_v20, %v1113_v19 }
  0x52   :  { %v121_v25 = vrot.slane %v120_v23, 2 }
  0x53   :  { %v83_v9 = vadd.f32 %v82_v2, %v81_v57  ;;  %v1994_v57 = vld [vmem:[#allocation7 + $0x178] sm:$0xff] }
  0x54   :  { %v122_v27 = vadd.f32 %v121_v25, %v120_v23  ;;  %v3120_v25 = vpack.c.bf16 %v1194_v22, %v1193_v21  ;;  %v2154_v2 = vld [vmem:[#allocation7 + $0x198] sm:$0xff]  ;;  %v2553_v22 = vld [vmem:[#allocation7 + $0x1e0] sm:$0xff] }
  0x55   :  { %v84_v16 = vrot.slane %v83_v9, 1 }
  0x56   :  { %v123_v29 = vrot.slane %v122_v27, 1 }
  0x57   :  { %v85_v23 = vadd.f32 %v84_v16, %v83_v9  ;;  %v2314_v9 = vld [vmem:[#allocation7 + $0x1b8] sm:$0xff]  ;;  %v2473_v16 = vld [vmem:[#allocation7 + $0x1d0] sm:$0xff] }
  0x58   :  { %v124_v31 = vadd.f32 %v123_v29, %v122_v27  ;;  %v1274_v27 = vld [vmem:[#allocation7 + $0xe8] sm:$0xff]  ;;  %v1354_v29 = vld [vmem:[#allocation7 + $0xf8] sm:$0xff] }
  0x59   :  { %v86_v30 = vmul.f32 0.125, %v85_v23  ;;  %v3126_v32 = vpack.c.bf16 %v1354_v29, %v1353_v28 }
  0x5a   :  { %v125_v33 = vmul.f32 0.125, %v124_v31  ;;  %v3123_v31 = vpack.c.bf16 %v1274_v27, %v1273_v26  ;;  %v2634_v26 = vld [vmem:[#allocation7 + $0x1f8] sm:$0xff] }
  0x5b   :  { %v87_v38 = vadd.f32 1e-05, %v86_v30 }
  0x5c   :  { %v126_v35 = vadd.f32 1e-05, %v125_v33  ;;  %v1433_v33 = vld [vmem:[#allocation7 + $0x100] sm:$0xff] }
  0x5e   :  { %3185 = vrsqrt.f32 %v126_v35  ;;  %v1513_v35 = vld [vmem:[#allocation7 + $0x110] sm:$0xff] }
  0x5f   :  { %3187 = vrsqrt.f32 %v87_v38 }
  0x68   :  { %v3186_v39 = vpop.eup %3185 }
  0x69   :  { %v128_v43 = vmul.f32 %v3186_v39, %v116_v17  ;;  %v3111_v17 = vpack.c.bf16 %v954_v13, %v953_v12  ;;  %v3129_v39 = vpack.c.bf16 %v1434_v34, %v1433_v33  ;;  %v3188_v61 = vpop.eup %3187  ;;  %v3162_v12 = vpack.c.bf16 %v2314_v9, %v2313_v8  ;;  %v2393_v13 = vld [vmem:[#allocation7 + $0x1c0] sm:$0xff] }
  0x6a   :  { %v89_v7 = vmul.f32 %v3188_v61, %v3379_v37  ;;  %v3159_v37 = vpack.c.bf16 %v2234_v6, %v2233_v5  ;;  %v3165_v20 = vpack.c.bf16 %v2394_v14, %v2393_v13 }
  0x6b   :  { %v135_v48 = vmul.f32 %v2726_v40, %v128_v43  ;;  %v3132_v40 = vpack.c.bf16 %v1514_v36, %v1513_v35  ;;  %v1673_v43 = vld [vmem:[#allocation7 + $0x130] sm:$0xff] }
  0x6c   :  { %v3138_v46 = vpack.c.bf16 %v1674_v44, %v1673_v43 }
  0x6d   :  { %v3390_v53 = vadd.f32 %v2727_v47, %v135_v48  ;;  %v1753_v47 = vld [vmem:[#allocation7 + $0x140] sm:$0xff]  ;;  %v1754_v48 = vld [vmem:[#allocation7 + $0x148] sm:$0xff] }
  0x6f   :  { %2861 = vmatmul.mubr.msk.f32.vlgmr.msra.gmra.mrb[0].mxu0 %vm107_vm1, %v3390_v53  ;;  %2868 = vmatmul.mubr.msk.f32.vlgmr.msra.gmra.mrb[0].mxu1 %vm107_vm1, %v3390_v53 }
  0x70   :  { %3088 = vmatpush3.bf16.msra.mxu0 %v3087_v50  ;;  %3091 = vmatpush3.bf16.msra.mxu1 %v3090_v51  ;;  %v1834_v50 = vld [vmem:[#allocation7 + $0x158] sm:$0xff]  ;;  %v3141_v51 = vpack.c.bf16 %v1754_v48, %v1753_v47 }
  0x71   :  { %2874 = vmatprep.mubr.msk.f32.mxu0 %vm3289_vm0, %v3290_v1  ;;  %3092 = vmatprep.subr.bf16.mxu0 %v3288_v0  ;;  %v3144_v52 = vpack.c.bf16 %v1834_v50, %v1833_v49 }
  0x72   :  { %2881 = vmatprep.mubr.msk.f32.mxu1 %vm3289_vm0, %v3290_v1  ;;  %3095 = vmatprep.subr.bf16.mxu1 %v3288_v0 }
  0x73   :  { %2875 = vmatmul.mubr.msk.f32.vlgmr.msra.gmra.mrb[2].mxu0 %vm107_vm1, %v3390_v53  ;;  %2882 = vmatmul.mubr.msk.f32.vlgmr.msra.gmra.mrb[2].mxu1 %vm107_vm1, %v3390_v53 }
  0x74   :  { %3094 = vmatpush3.bf16.msra.mxu0 %v3093_v58  ;;  %3097 = vmatpush3.bf16.msra.mxu1 %v3096_v59  ;;  %v3147_v58 = vpack.c.bf16 %v1914_v55, %v1913_v54  ;;  %v3150_v59 = vpack.c.bf16 %v1994_v57, %v1993_v56 }
  0x75   :  { %2888 = vmatprep.mubr.msk.f32.mxu0 %vm3289_vm0, %v3290_v1  ;;  %3098 = vmatprep.subr.bf16.mxu0 %v3288_v0 }
  0x76   :  { %2895 = vmatprep.mubr.msk.f32.mxu1 %vm3289_vm0, %v3290_v1  ;;  %3101 = vmatprep.subr.bf16.mxu1 %v3288_v0 }
  0x77   :  { %2889 = vmatmul.mubr.msk.f32.vlgmr.msra.gmra.mrb[4].mxu0 %vm107_vm1, %v3390_v53  ;;  %2896 = vmatmul.mubr.msk.f32.vlgmr.msra.gmra.mrb[4].mxu1 %vm107_vm1, %v3390_v53 }
  0x78   :  { %3100 = vmatpush3.bf16.msra.mxu0 %v3099_v3  ;;  %3103 = vmatpush3.bf16.msra.mxu1 %v3102_v4  ;;  %v3153_v3 = vpack.c.bf16 %v2074_v62, %v2073_v60  ;;  %v3156_v4 = vpack.c.bf16 %v2154_v2, %v2153_v63 }
  0x79   :  { %2902 = vmatprep.mubr.msk.f32.mxu0 %vm3289_vm0, %v3290_v1  ;;  %3104 = vmatprep.subr.bf16.mxu0 %v3288_v0 }
  0x7a   :  { %2909 = vmatprep.mubr.msk.f32.mxu1 %vm3289_vm0, %v3290_v1  ;;  %3107 = vmatprep.subr.bf16.mxu1 %v3288_v0 }
  0x7b   :  { %2903 = vmatmul.mubr.msk.f32.vlgmr.msra.gmra.mrb[6].mxu0 %vm107_vm1, %v3390_v53  ;;  %2910 = vmatmul.mubr.msk.f32.vlgmr.msra.gmra.mrb[6].mxu1 %vm107_vm1, %v3390_v53 }
  0x7c   :  { %3106 = vmatpush3.bf16.msra.mxu0 %v3105_v10  ;;  %3109 = vmatpush3.bf16.msra.mxu1 %v3108_v11  ;;  %v2724_v10 = vld [vmem:[%s3666_s2] ss:$0 sm:$0xff]  ;;  %v143_v11 = vlaneseq }
  0x7d   :  { %2916 = vmatprep.mubr.msk.f32.mxu0 %vm3289_vm0, %v3290_v1  ;;  %3110 = vmatprep.subr.bf16.mxu0 %v3288_v0  ;;  %v96_v15 = vmul.f32 %v2724_v10, %v89_v7 }
  0x7e   :  { %2923 = vmatprep.mubr.msk.f32.mxu1 %vm3289_vm0, %v3290_v1  ;;  %3113 = vmatprep.subr.bf16.mxu1 %v3288_v0  ;;  %v3516_v19 = vand.u32 127, %v143_v11 }
  0x7f   :  { %2917 = vmatmul.mubr.msk.f32.vlgmr.msra.gmra.mrb[8].mxu0 %vm107_vm1, %v3390_v53  ;;  %2924 = vmatmul.mubr.msk.f32.vlgmr.msra.gmra.mrb[8].mxu1 %vm107_vm1, %v3390_v53 }
  0x80   :  { %3112 = vmatpush3.bf16.msra.mxu0 %v3111_v17  ;;  %3115 = vmatpush3.bf16.msra.mxu1 %v3114_v18  ;;  %v2474_v17 = vld [vmem:[#allocation7 + $0x1d8] sm:$0xff]  ;;  %v2725_v18 = vld [vmem:[%s3667_s3] ss:$0 sm:$0xff]  ;;  %vm145_vm3 = vcmp.eq.s32.totalorder %v3516_v19, 0  ;;  %vm307_vm4 = vcmp.eq.s32.totalorder %v3516_v19, 2  ;;  %vm227_vm5 = vcmp.eq.s32.totalorder %v3516_v19, 1 }
  0x81   :  { %2930 = vmatprep.mubr.msk.f32.mxu0 %vm3289_vm0, %v3290_v1  ;;  %3116 = vmatprep.subr.bf16.mxu0 %v3288_v0  ;;  %v3168_v21 = vpack.c.bf16 %v2474_v17, %v2473_v16  ;;  %v3525_v23 = vadd.f32 %v2725_v18, %v96_v15  ;;  %vm387_vm6 = vcmp.eq.s32.totalorder %v3516_v19, 3  ;;  %vm467_vm7 = vcmp.eq.s32.totalorder %v3516_v19, 4  ;;  %s3291_s3 = smov [#allocation8]  }
  0x82   :  { %2937 = vmatprep.mubr.msk.f32.mxu1 %vm3289_vm0, %v3290_v1  ;;  %3119 = vmatprep.subr.bf16.mxu1 %v3288_v0  ;;  %vm547_vm8 = vcmp.eq.s32.totalorder %v3516_v19, 5  ;;  %vm627_vm9 = vcmp.eq.s32.totalorder %v3516_v19, 6  ;;  %vm707_vm10 = vcmp.eq.s32.totalorder %v3516_v19, 7  ;;  %vm787_vm11 = vcmp.eq.s32.totalorder %v3516_v19, 8  ;;  %s2714_s18 = sshll.u32 %s3291_s3, 4  ;;  %s2715_s18 = int_to_ptr.vmem [resolvable:$true] %s2714_s18 }
  0x83   :  { %2931 = vmatmul.mubr.msk.f32.vlgmr.msra.gmra.mrb[10].mxu0 %vm107_vm1, %v3390_v53  ;;  %2938 = vmatmul.mubr.msk.f32.vlgmr.msra.gmra.mrb[10].mxu1 %vm107_vm1, %v3390_v53  ;;  %v146_v29 = vsel %vm145_vm3, %v3525_v23, 0.0  ;;  %v308_v30 = vsel %vm307_vm4, %v3525_v23, 0.0  ;;  %v228_v33 = vsel %vm227_vm5, %v3525_v23, 0.0  ;;  %v388_v34 = vsel %vm387_vm6, %v3525_v23, 0.0  ;;  %s3255_s19 = scalar_lea.vmem %s2715_s18, 128  ;;  %p3260_p11 = scmp.lt.s32.totalorder %s2715_s18, %s2715_s18 }
  0x84   :  { %3118 = vmatpush3.bf16.msra.mxu0 %v3117_v24  ;;  %3121 = vmatpush3.bf16.msra.mxu1 %v3120_v25  ;;  %v2554_v24 = vld [vmem:[#allocation7 + $0x1e8] sm:$0xff]  ;;  %v2633_v25 = vld [vmem:[#allocation7 + $0x1f0] sm:$0xff]  ;;  %v389_v35 = vsel %vm67_vm2, %v388_v34, 0.0  ;;  %v468_v36 = vsel %vm467_vm7, %v3525_v23, 0.0  ;;  %vm867_vm12 = vcmp.eq.s32.totalorder %v3516_v19, 9  ;;  %v788_v43 = vsel %vm787_vm11, %v3525_v23, 0.0  ;;  %p3256_p10 = scmp.ne.s32.totalorder %s2715_s18, %s3255_s19  ;;  %p3261_p12 = scmp.lt.s32.totalorder %s3255_s19, %s3255_s19 }
  0x85   :  { %2944 = vmatprep.mubr.msk.f32.mxu0 %vm3289_vm0, %v3290_v1  ;;  %3122 = vmatprep.subr.bf16.mxu0 %v3288_v0  ;;  %v3171_v27 = vpack.c.bf16 %v2554_v24, %v2553_v22  ;;  %v3174_v28 = vpack.c.bf16 %v2634_v26, %v2633_v25  ;;  %v469_v38 = vsel %vm67_vm2, %v468_v36, 0.0  ;;  %v868_v44 = vsel %vm867_vm12, %v3525_v23, 0.0 }
  0x86   :  { %2951 = vmatprep.mubr.msk.f32.mxu1 %vm3289_vm0, %v3290_v1  ;;  %3125 = vmatprep.subr.bf16.mxu1 %v3288_v0  ;;  %vm947_vm13 = vcmp.eq.s32.totalorder %v3516_v19, 10  ;;  %vm1027_vm14 = vcmp.eq.s32.totalorder %v3516_v19, 11  ;;  %vm1107_vm15 = vcmp.eq.s32.totalorder %v3516_v19, 12  ;;  %vm1347_vm3 = vcmp.eq.s32.totalorder %v3516_v19, 15  ;;  %p3262_p13 = por %p3261_p12, %p3260_p11 }
  0x87   :  { %2945 = vmatmul.mubr.msk.f32.vlgmr.msra.gmra.mrb[12].mxu0 %vm107_vm1, %v3390_v53  ;;  %2952 = vmatmul.mubr.msk.f32.vlgmr.msra.gmra.mrb[12].mxu1 %vm107_vm1, %v3390_v53  ;;  %v948_v47 = vsel %vm947_vm13, %v3525_v23, 0.0  ;;  %v1028_v48 = vsel %vm1027_vm14, %v3525_v23, 0.0  ;;  %v1348_v57 = vsel %vm1347_vm3, %v3525_v23, 0.0  ;;  %vm1427_vm4 = vcmp.eq.s32.totalorder %v3516_v19, 16 }
  0x88   :  { %3124 = vmatpush3.bf16.msra.mxu0 %v3123_v31  ;;  %3127 = vmatpush3.bf16.msra.mxu1 %v3126_v32  ;;  %v147_v31 = vsel %vm67_vm2, %v146_v29, 0.0  ;;  %v309_v32 = vsel %vm67_vm2, %v308_v30, 0.0  ;;  %v949_v49 = vsel %vm67_vm2, %v948_v47, 0.0  ;;  %v1029_v50 = vsel %vm67_vm2, %v1028_v48, 0.0  ;;  %p3263_p0 = pnand %p3262_p13, %p3256_p10 }
  0x89   :  { %2958 = vmatprep.mubr.msk.f32.mxu0 %vm3289_vm0, %v3290_v1  ;;  %3128 = vmatprep.subr.bf16.mxu0 %v3288_v0  ;;  %vm1507_vm5 = vcmp.eq.s32.totalorder %v3516_v19, 17  ;;  %v1428_v60 = vsel %vm1427_vm4, %v3525_v23, 0.0  ;;  %vm1587_vm6 = vcmp.eq.s32.totalorder %v3516_v19, 18  ;;  %vm1667_vm7 = vcmp.eq.s32.totalorder %v3516_v19, 19 }
  0x8a   :  { %2965 = vmatprep.mubr.msk.f32.mxu1 %vm3289_vm0, %v3290_v1  ;;  %3131 = vmatprep.subr.bf16.mxu1 %v3288_v0  ;;  %v1508_v61 = vsel %vm1507_vm5, %v3525_v23, 0.0  ;;  %v1429_v62 = vsel %vm67_vm2, %v1428_v60, 0.0  ;;  %v1588_v2 = vsel %vm1587_vm6, %v3525_v23, 0.0  ;;  %vm1987_vm11 = vcmp.eq.s32.totalorder %v3516_v19, 23 }
  0x8b   :  { %2959 = vmatmul.mubr.msk.f32.vlgmr.msra.gmra.mrb[14].mxu0 %vm107_vm1, %v3390_v53  ;;  %2966 = vmatmul.mubr.msk.f32.vlgmr.msra.gmra.mrb[14].mxu1 %vm107_vm1, %v3390_v53  ;;  %v1509_v63 = vsel %vm67_vm2, %v1508_v61, 0.0  ;;  %v1988_v11 = vsel %vm1987_vm11, %v3525_v23, 0.0  ;;  %vm2067_vm12 = vcmp.eq.s32.totalorder %v3516_v19, 24  ;;  %vm2147_vm13 = vcmp.eq.s32.totalorder %v3516_v19, 25 }
  0x8c   :  { %3130 = vmatpush3.bf16.msra.mxu0 %v3129_v39  ;;  %3133 = vmatpush3.bf16.msra.mxu1 %v3132_v40  ;;  %v708_v40 = vsel %vm707_vm10, %v3525_v23, 0.0  ;;  %vm1907_vm10 = vcmp.eq.s32.totalorder %v3516_v19, 22  ;;  %v2068_v13 = vsel %vm2067_vm12, %v3525_v23, 0.0  ;;  %v2148_v14 = vsel %vm2147_vm13, %v3525_v23, 0.0 }
  0x8d   :  { %2972 = vmatprep.mubr.msk.f32.mxu0 %vm3289_vm0, %v3290_v1  ;;  %3134 = vmatprep.subr.bf16.mxu0 %v3288_v0  ;;  %v709_v42 = vsel %vm67_vm2, %v708_v40, 0.0  ;;  %v1908_v10 = vsel %vm1907_vm10, %v3525_v23, 0.0  ;;  %vm2227_vm14 = vcmp.eq.s32.totalorder %v3516_v19, 26  ;;  %v2069_v15 = vsel %vm67_vm2, %v2068_v13, 0.0 }
  0x8e   :  { %2979 = vmatprep.mubr.msk.f32.mxu1 %vm3289_vm0, %v3290_v1  ;;  %3137 = vmatprep.subr.bf16.mxu1 %v3288_v0  ;;  %v2149_v16 = vsel %vm67_vm2, %v2148_v14, 0.0  ;;  %v2228_v17 = vsel %vm2227_vm14, %v3525_v23, 0.0  ;;  %vm2547_vm3 = vcmp.eq.s32.totalorder %v3516_v19, 30  ;;  %vm2627_vm4 = vcmp.eq.s32.totalorder %v3516_v19, 31 }
  0x8f   :  { %2973 = vmatmul.mubr.msk.f32.vlgmr.msra.gmra.mrb[16].mxu0 %vm107_vm1, %v3390_v53  ;;  %2980 = vmatmul.mubr.msk.f32.vlgmr.msra.gmra.mrb[16].mxu1 %vm107_vm1, %v3390_v53 }
  0x90   :  { %3136 = vmatpush3.bf16.msra.mxu0 %v3135_v45  ;;  %3139 = vmatpush3.bf16.msra.mxu1 %v3138_v46  ;;  %v789_v45 = vsel %vm67_vm2, %v788_v43, 0.0  ;;  %v869_v46 = vsel %vm67_vm2, %v868_v44, 0.0 }
  0x91   :  { %2986 = vmatprep.mubr.msk.f32.mxu0 %vm3289_vm0, %v3290_v1  ;;  %3140 = vmatprep.subr.bf16.mxu0 %v3288_v0 }
  0x92   :  { %2993 = vmatprep.mubr.msk.f32.mxu1 %vm3289_vm0, %v3290_v1  ;;  %3143 = vmatprep.subr.bf16.mxu1 %v3288_v0 }
  0x93   :  { %2987 = vmatmul.mubr.msk.f32.vlgmr.msra.gmra.mrb[18].mxu0 %vm107_vm1, %v3390_v53  ;;  %2994 = vmatmul.mubr.msk.f32.vlgmr.msra.gmra.mrb[18].mxu1 %vm107_vm1, %v3390_v53 }
  0x94   :  { %3142 = vmatpush3.bf16.msra.mxu0 %v3141_v51  ;;  %3145 = vmatpush3.bf16.msra.mxu1 %v3144_v52  ;;  %v1108_v51 = vsel %vm1107_vm15, %v3525_v23, 0.0  ;;  %vm2307_vm15 = vcmp.eq.s32.totalorder %v3516_v19, 27 }
  0x95   :  { %3000 = vmatprep.mubr.msk.f32.mxu0 %vm3289_vm0, %v3290_v1  ;;  %3146 = vmatprep.subr.bf16.mxu0 %v3288_v0  ;;  %v1109_v54 = vsel %vm67_vm2, %v1108_v51, 0.0  ;;  %v2308_v18 = vsel %vm2307_vm15, %v3525_v23, 0.0 }
  0x96   :  { %3007 = vmatprep.mubr.msk.f32.mxu1 %vm3289_vm0, %v3290_v1  ;;  %3149 = vmatprep.subr.bf16.mxu1 %v3288_v0 }
  0x97   :  { %3001 = vmatmul.mubr.msk.f32.vlgmr.msra.gmra.mrb[20].mxu0 %vm107_vm1, %v3390_v53  ;;  %3008 = vmatmul.mubr.msk.f32.vlgmr.msra.gmra.mrb[20].mxu1 %vm107_vm1, %v3390_v53 }
  0x98   :  { %3148 = vmatpush3.bf16.msra.mxu0 %v3147_v58  ;;  %3151 = vmatpush3.bf16.msra.mxu1 %v3150_v59  ;;  %v1349_v59 = vsel %vm67_vm2, %v1348_v57, 0.0 }
  0x99   :  { %3014 = vmatprep.mubr.msk.f32.mxu0 %vm3289_vm0, %v3290_v1  ;;  %3152 = vmatprep.subr.bf16.mxu0 %v3288_v0 }
  0x9a   :  { %3021 = vmatprep.mubr.msk.f32.mxu1 %vm3289_vm0, %v3290_v1  ;;  %3155 = vmatprep.subr.bf16.mxu1 %v3288_v0 }
  0x9b   :  { %3015 = vmatmul.mubr.msk.f32.vlgmr.msra.gmra.mrb[22].mxu0 %vm107_vm1, %v3390_v53  ;;  %3022 = vmatmul.mubr.msk.f32.vlgmr.msra.gmra.mrb[22].mxu1 %vm107_vm1, %v3390_v53 }
  0x9c   :  { %3154 = vmatpush3.bf16.msra.mxu0 %v3153_v3  ;;  %3157 = vmatpush3.bf16.msra.mxu1 %v3156_v4  ;;  %v1668_v3 = vsel %vm1667_vm7, %v3525_v23, 0.0  ;;  %v1589_v4 = vsel %vm67_vm2, %v1588_v2, 0.0 }
  0x9d   :  { %3028 = vmatprep.mubr.msk.f32.mxu0 %vm3289_vm0, %v3290_v1  ;;  %3158 = vmatprep.subr.bf16.mxu0 %v3288_v0  ;;  %v1669_v5 = vsel %vm67_vm2, %v1668_v3, 0.0 }
  0x9e   :  { %3035 = vmatprep.mubr.msk.f32.mxu1 %vm3289_vm0, %v3290_v1  ;;  %3161 = vmatprep.subr.bf16.mxu1 %v3288_v0 }
  0x9f   :  { %3029 = vmatmul.mubr.msk.f32.vlgmr.msra.gmra.mrb[24].mxu0 %vm107_vm1, %v3390_v53  ;;  %3036 = vmatmul.mubr.msk.f32.vlgmr.msra.gmra.mrb[24].mxu1 %vm107_vm1, %v3390_v53 }
  0xa0   :  { %3160 = vmatpush3.bf16.msra.mxu0 %v3159_v37  ;;  %3163 = vmatpush3.bf16.msra.mxu1 %v3162_v12  ;;  %v1909_v37 = vsel %vm67_vm2, %v1908_v10, 0.0  ;;  %v1989_v12 = vsel %vm67_vm2, %v1988_v11, 0.0 }
  0xa1   :  { %3042 = vmatprep.mubr.msk.f32.mxu0 %vm3289_vm0, %v3290_v1  ;;  %3164 = vmatprep.subr.bf16.mxu0 %v3288_v0 }
  0xa2   :  { %3049 = vmatprep.mubr.msk.f32.mxu1 %vm3289_vm0, %v3290_v1  ;;  %3167 = vmatprep.subr.bf16.mxu1 %v3288_v0 }
  0xa3   :  { %3043 = vmatmul.mubr.msk.f32.vlgmr.msra.gmra.mrb[26].mxu0 %vm107_vm1, %v3390_v53  ;;  %3050 = vmatmul.mubr.msk.f32.vlgmr.msra.gmra.mrb[26].mxu1 %vm107_vm1, %v3390_v53 }
  0xa4   :  { %3166 = vmatpush3.bf16.msra.mxu0 %v3165_v20  ;;  %3169 = vmatpush3.bf16.msra.mxu1 %v3168_v21  ;;  %v2229_v20 = vsel %vm67_vm2, %v2228_v17, 0.0  ;;  %v2309_v21 = vsel %vm67_vm2, %v2308_v18, 0.0 }
  0xa5   :  { %3056 = vmatprep.mubr.msk.f32.mxu0 %vm3289_vm0, %v3290_v1  ;;  %3170 = vmatprep.subr.bf16.mxu0 %v3288_v0 }
  0xa6   :  { %3063 = vmatprep.mubr.msk.f32.mxu1 %vm3289_vm0, %v3290_v1  ;;  %3173 = vmatprep.subr.bf16.mxu1 %v3288_v0  ;;  %v229_v0 = vsel %vm67_vm2, %v228_v33, 0.0 }
  0xa7   :  { %3057 = vmatmul.mubr.msk.f32.vlgmr.msra.gmra.mrb[28].mxu0 %vm107_vm1, %v3390_v53  ;;  %3064 = vmatmul.mubr.msk.f32.vlgmr.msra.gmra.mrb[28].mxu1 %vm107_vm1, %v3390_v53 }
  0xa8   :  { %3172 = vmatpush3.bf16.msra.mxu0 %v3171_v27  ;;  %3175 = vmatpush3.bf16.msra.mxu1 %v3174_v28  ;;  %v2548_v27 = vsel %vm2547_vm3, %v3525_v23, 0.0  ;;  %v2628_v28 = vsel %vm2627_vm4, %v3525_v23, 0.0 }
  0xa9   :  { %3070 = vmatprep.mubr.msk.f32.mxu0 %vm3289_vm0, %v3290_v1  ;;  %3077 = vmatprep.mubr.msk.f32.mxu1 %vm3289_vm0, %v3290_v1  ;;  %v548_v1 = vsel %vm547_vm8, %v3525_v23, 0.0  ;;  %vm1187_vm0 = vcmp.eq.s32.totalorder %v3516_v19, 13  ;;  %vm1747_vm8 = vcmp.eq.s32.totalorder %v3516_v19, 20  ;;  %v2549_v29 = vsel %vm67_vm2, %v2548_v27, 0.0 }
  0xaa   :  { %148 = vadd.xlane.f32.xlu0 %v147_v31  ;;  %310 = vadd.xlane.f32.xlu1 %v309_v32  ;;  %v549_v39 = vsel %vm67_vm2, %v548_v1, 0.0  ;;  %v1188_v52 = vsel %vm1187_vm0, %v3525_v23, 0.0  ;;  %v1748_v6 = vsel %vm1747_vm8, %v3525_v23, 0.0  ;;  %vm2387_vm0 = vcmp.eq.s32.totalorder %v3516_v19, 28 }
  0xab   :  { %3071 = vmatmul.mubr.msk.f32.vlgmr.msra.gmra.mrb[30].mxu0 %vm107_vm1, %v3390_v53  ;;  %3078 = vmatmul.mubr.msk.f32.vlgmr.msra.gmra.mrb[30].mxu1 %vm107_vm1, %v3390_v53  ;;  %v628_v53 = vsel %vm627_vm9, %v3525_v23, 0.0  ;;  %vm1267_vm1 = vcmp.eq.s32.totalorder %v3516_v19, 14  ;;  %v1189_v55 = vsel %vm67_vm2, %v1188_v52, 0.0  ;;  %vm1827_vm9 = vcmp.eq.s32.totalorder %v3516_v19, 21 }
  0xac   :  { %v629_v41 = vsel %vm67_vm2, %v628_v53, 0.0  ;;  %v1268_v56 = vsel %vm1267_vm1, %v3525_v23, 0.0  ;;  %v1828_v7 = vsel %vm1827_vm9, %v3525_v23, 0.0  ;;  %v1749_v8 = vsel %vm67_vm2, %v1748_v6, 0.0 }
  0xad   :  { %v1269_v58 = vsel %vm67_vm2, %v1268_v56, 0.0  ;;  %v1829_v9 = vsel %vm67_vm2, %v1828_v7, 0.0  ;;  %vm2467_vm1 = vcmp.eq.s32.totalorder %v3516_v19, 29  ;;  %v2388_v22 = vsel %vm2387_vm0, %v3525_v23, 0.0 }
  0xae   :  { %230 = vadd.xlane.f32.xlu0 %v229_v0  ;;  %390 = vadd.xlane.f32.xlu1 %v389_v35  ;;  %v2468_v24 = vsel %vm2467_vm1, %v3525_v23, 0.0  ;;  %v2389_v25 = vsel %vm67_vm2, %v2388_v22, 0.0  ;;  %v2629_v30 = vsel %vm67_vm2, %v2628_v28, 0.0 }
  0xaf   :  { %v2469_v26 = vsel %vm67_vm2, %v2468_v24, 0.0 }
  0xb2   :  { %470 = vadd.xlane.f32.xlu0 %v469_v38  ;;  %550 = vadd.xlane.f32.xlu1 %v549_v39 }
  0xb6   :  { %630 = vadd.xlane.f32.xlu0 %v629_v41  ;;  %710 = vadd.xlane.f32.xlu1 %v709_v42 }
  0xba   :  { %790 = vadd.xlane.f32.xlu0 %v789_v45  ;;  %870 = vadd.xlane.f32.xlu1 %v869_v46 }
  0xbe   :  { %950 = vadd.xlane.f32.xlu0 %v949_v49  ;;  %1030 = vadd.xlane.f32.xlu1 %v1029_v50 }
  0xc2   :  { %1110 = vadd.xlane.f32.xlu0 %v1109_v54  ;;  %1190 = vadd.xlane.f32.xlu1 %v1189_v55 }
  0xc6   :  { %1270 = vadd.xlane.f32.xlu0 %v1269_v58  ;;  %1350 = vadd.xlane.f32.xlu1 %v1349_v59 }
  0xca   :  { %1430 = vadd.xlane.f32.xlu0 %v1429_v62  ;;  %1510 = vadd.xlane.f32.xlu1 %v1509_v63 }
  0xce   :  { %1590 = vadd.xlane.f32.xlu0 %v1589_v4  ;;  %1670 = vadd.xlane.f32.xlu1 %v1669_v5 }
  0xd2   :  { %1750 = vadd.xlane.f32.xlu0 %v1749_v8  ;;  %1830 = vadd.xlane.f32.xlu1 %v1829_v9 }
  0xd6   :  { %1910 = vadd.xlane.f32.xlu0 %v1909_v37  ;;  %1990 = vadd.xlane.f32.xlu1 %v1989_v12 }
  0xda   :  { %2070 = vadd.xlane.f32.xlu0 %v2069_v15  ;;  %2150 = vadd.xlane.f32.xlu1 %v2149_v16 }
  0xde   :  { %2230 = vadd.xlane.f32.xlu0 %v2229_v20  ;;  %2310 = vadd.xlane.f32.xlu1 %v2309_v21 }
  0xe2   :  { %2390 = vadd.xlane.f32.xlu0 %v2389_v25  ;;  %2470 = vadd.xlane.f32.xlu1 %v2469_v26 }
  0xe6   :  { %2550 = vadd.xlane.f32.xlu0 %v2549_v29  ;;  %2630 = vadd.xlane.f32.xlu1 %v2629_v30 }
 0x137   :  { %v149_v31 = vpop.xlane.xlu0 %148  ;;  %v311_v19 = vpop.xlane.xlu1 %310 }
 0x13b   :  { %v231_v32 = vpop.xlane.xlu0 %230  ;;  %v391_v33 = vpop.xlane.xlu1 %390 }
 0x13f   :  { %v471_v34 = vpop.xlane.xlu0 %470  ;;  %v551_v0 = vpop.xlane.xlu1 %550 }
 0x142   :  { %v221_v35 = vpop.f32.mrb[0].mxu0  ;;  %v301_v36 = vpop.f32.mrb[0].mxu1 }
 0x143   :  { %v225_v1 = vmul.f32 %v221_v35, %v149_v31  ;;  %v305_v38 = vmul.f32 %v301_v36, %v231_v32  ;;  %v2862_v39 = vpop.f32.mrb[1].mxu0  ;;  %v2869_v23 = vpop.f32.mrb[1].mxu1 }
 0x144   :  { %v631_v53 = vpop.xlane.xlu0 %630  ;;  %v711_v40 = vpop.xlane.xlu1 %710 }
 0x145   :  { %v306_v41 = vadd.f32 %v305_v38, %v225_v1 }
 0x146   :  { %v381_v42 = vpop.f32.mrb[2].mxu0  ;;  %v461_v43 = vpop.f32.mrb[2].mxu1 }
 0x147   :  { %v385_v44 = vmul.f32 %v381_v42, %v311_v19  ;;  %v2876_v45 = vpop.f32.mrb[3].mxu0  ;;  %v2883_v46 = vpop.f32.mrb[3].mxu1  ;;  %v465_v47 = vmul.f32 %v461_v43, %v391_v33 }
 0x148   :  { %v791_v48 = vpop.xlane.xlu0 %790  ;;  %v871_v49 = vpop.xlane.xlu1 %870 }
 0x149   :  { %v386_v50 = vadd.f32 %v385_v44, %v306_v41 }
 0x14a   :  { %v541_v51 = vpop.f32.mrb[4].mxu0  ;;  %v621_v52 = vpop.f32.mrb[4].mxu1 }
 0x14b   :  { %v466_v54 = vadd.f32 %v465_v47, %v386_v50  ;;  %v545_v55 = vmul.f32 %v541_v51, %v471_v34  ;;  %v2890_v56 = vpop.f32.mrb[5].mxu0  ;;  %v2897_v57 = vpop.f32.mrb[5].mxu1  ;;  %v625_v58 = vmul.f32 %v621_v52, %v551_v0 }
 0x14c   :  { %v951_v59 = vpop.xlane.xlu0 %950  ;;  %v1031_v60 = vpop.xlane.xlu1 %1030 }
 0x14d   :  { %v546_v61 = vadd.f32 %v545_v55, %v466_v54 }
 0x14e   :  { %v701_v62 = vpop.f32.mrb[6].mxu0  ;;  %v781_v63 = vpop.f32.mrb[6].mxu1 }
 0x14f   :  { %v626_v2 = vadd.f32 %v625_v58, %v546_v61  ;;  %v705_v3 = vmul.f32 %v701_v62, %v631_v53  ;;  %v2904_v4 = vpop.f32.mrb[7].mxu0  ;;  %v2911_v5 = vpop.f32.mrb[7].mxu1  ;;  %v785_v6 = vmul.f32 %v781_v63, %v711_v40 }
 0x150   :  { %v1111_v7 = vpop.xlane.xlu0 %1110  ;;  %v1191_v8 = vpop.xlane.xlu1 %1190 }
 0x151   :  { %v706_v9 = vadd.f32 %v705_v3, %v626_v2 }
 0x152   :  { %v861_v10 = vpop.f32.mrb[8].mxu0  ;;  %v941_v11 = vpop.f32.mrb[8].mxu1 }
 0x153   :  { %v786_v37 = vadd.f32 %v785_v6, %v706_v9  ;;  %v865_v12 = vmul.f32 %v861_v10, %v791_v48  ;;  %v2918_v13 = vpop.f32.mrb[9].mxu0  ;;  %v2925_v14 = vpop.f32.mrb[9].mxu1  ;;  %v945_v15 = vmul.f32 %v941_v11, %v871_v49 }
 0x154   :  { %v1271_v16 = vpop.xlane.xlu0 %1270  ;;  %v1351_v17 = vpop.xlane.xlu1 %1350 }
 0x155   :  { %v866_v18 = vadd.f32 %v865_v12, %v786_v37 }
 0x156   :  { %v1021_v20 = vpop.f32.mrb[10].mxu0  ;;  %v1101_v21 = vpop.f32.mrb[10].mxu1 }
 0x157   :  { %v946_v22 = vadd.f32 %v945_v15, %v866_v18  ;;  %v1025_v24 = vmul.f32 %v1021_v20, %v951_v59  ;;  %v2932_v25 = vpop.f32.mrb[11].mxu0  ;;  %v2939_v26 = vpop.f32.mrb[11].mxu1  ;;  %v1105_v27 = vmul.f32 %v1101_v21, %v1031_v60 }
 0x158   :  { %v1431_v28 = vpop.xlane.xlu0 %1430  ;;  %v1511_v29 = vpop.xlane.xlu1 %1510 }
 0x159   :  { %v1026_v30 = vadd.f32 %v1025_v24, %v946_v22 }
 0x15a   :  { %v1181_v31 = vpop.f32.mrb[12].mxu0  ;;  %v1261_v19 = vpop.f32.mrb[12].mxu1 }
 0x15b   :  { %v1106_v32 = vadd.f32 %v1105_v27, %v1026_v30  ;;  %v1185_v33 = vmul.f32 %v1181_v31, %v1111_v7  ;;  %v2946_v34 = vpop.f32.mrb[13].mxu0  ;;  %v2953_v0 = vpop.f32.mrb[13].mxu1  ;;  %v1265_v35 = vmul.f32 %v1261_v19, %v1191_v8 }
 0x15c   :  { %v1591_v36 = vpop.xlane.xlu0 %1590  ;;  %v1671_v1 = vpop.xlane.xlu1 %1670 }
 0x15d   :  { %v1186_v38 = vadd.f32 %v1185_v33, %v1106_v32 }
 0x15e   :  { %v1341_v39 = vpop.f32.mrb[14].mxu0  ;;  %v1421_v23 = vpop.f32.mrb[14].mxu1 }
 0x15f   :  { %v1266_v53 = vadd.f32 %v1265_v35, %v1186_v38  ;;  %v1345_v40 = vmul.f32 %v1341_v39, %v1271_v16  ;;  %v2960_v41 = vpop.f32.mrb[15].mxu0  ;;  %v2967_v42 = vpop.f32.mrb[15].mxu1  ;;  %v1425_v43 = vmul.f32 %v1421_v23, %v1351_v17 }
 0x160   :  { %v1751_v44 = vpop.xlane.xlu0 %1750  ;;  %v1831_v45 = vpop.xlane.xlu1 %1830 }
 0x161   :  { %v1346_v46 = vadd.f32 %v1345_v40, %v1266_v53 }
 0x162   :  { %v1501_v47 = vpop.f32.mrb[16].mxu0  ;;  %v1581_v48 = vpop.f32.mrb[16].mxu1 }
 0x163   :  { %v1426_v49 = vadd.f32 %v1425_v43, %v1346_v46  ;;  %v1505_v50 = vmul.f32 %v1501_v47, %v1431_v28  ;;  %v2974_v51 = vpop.f32.mrb[17].mxu0  ;;  %v2981_v52 = vpop.f32.mrb[17].mxu1  ;;  %v1585_v54 = vmul.f32 %v1581_v48, %v1511_v29 }
 0x164   :  { %v1911_v55 = vpop.xlane.xlu0 %1910  ;;  %v1991_v56 = vpop.xlane.xlu1 %1990 }
 0x165   :  { %v1506_v57 = vadd.f32 %v1505_v50, %v1426_v49 }
 0x166   :  { %v1661_v58 = vpop.f32.mrb[18].mxu0  ;;  %v1741_v59 = vpop.f32.mrb[18].mxu1 }
 0x167   :  { %v1586_v60 = vadd.f32 %v1585_v54, %v1506_v57  ;;  %v1665_v61 = vmul.f32 %v1661_v58, %v1591_v36  ;;  %v2988_v62 = vpop.f32.mrb[19].mxu0  ;;  %v2995_v63 = vpop.f32.mrb[19].mxu1  ;;  %v1745_v2 = vmul.f32 %v1741_v59, %v1671_v1 }
 0x168   :  { %v2071_v3 = vpop.xlane.xlu0 %2070  ;;  %v2151_v4 = vpop.xlane.xlu1 %2150 }
 0x169   :  { %v1666_v5 = vadd.f32 %v1665_v61, %v1586_v60 }
 0x16a   :  { %v1821_v6 = vpop.f32.mrb[20].mxu0  ;;  %v1901_v7 = vpop.f32.mrb[20].mxu1 }
 0x16b   :  { %v1746_v8 = vadd.f32 %v1745_v2, %v1666_v5  ;;  %v1825_v9 = vmul.f32 %v1821_v6, %v1751_v44  ;;  %v3002_v10 = vpop.f32.mrb[21].mxu0  ;;  %v3009_v11 = vpop.f32.mrb[21].mxu1  ;;  %v1905_v37 = vmul.f32 %v1901_v7, %v1831_v45 }
 0x16c   :  { %v2231_v13 = vpop.xlane.xlu0 %2230  ;;  %v2311_v14 = vpop.xlane.xlu1 %2310 }
 0x16d   :  { %v1826_v12 = vadd.f32 %v1825_v9, %v1746_v8 }
 0x16e   :  { %v1981_v15 = vpop.f32.mrb[22].mxu0  ;;  %v2061_v16 = vpop.f32.mrb[22].mxu1 }
 0x16f   :  { %v1906_v17 = vadd.f32 %v1905_v37, %v1826_v12  ;;  %v1985_v18 = vmul.f32 %v1981_v15, %v1911_v55  ;;  %v3016_v20 = vpop.f32.mrb[23].mxu0  ;;  %v3023_v21 = vpop.f32.mrb[23].mxu1  ;;  %v2065_v22 = vmul.f32 %v2061_v16, %v1991_v56 }
 0x170   :  { %v2391_v32 = vpop.xlane.xlu0 %2390  ;;  %v2471_v33 = vpop.xlane.xlu1 %2470 }
 0x171   :  { %v1986_v24 = vadd.f32 %v1985_v18, %v1906_v17 }
 0x172   :  { %v2141_v25 = vpop.f32.mrb[24].mxu0  ;;  %v2221_v26 = vpop.f32.mrb[24].mxu1 }
 0x173   :  { %v2066_v27 = vadd.f32 %v2065_v22, %v1986_v24  ;;  %v2145_v28 = vmul.f32 %v2141_v25, %v2071_v3  ;;  %v3030_v29 = vpop.f32.mrb[25].mxu0  ;;  %v3037_v30 = vpop.f32.mrb[25].mxu1  ;;  %v2225_v31 = vmul.f32 %v2221_v26, %v2151_v4 }
 0x174   :  { %v2551_v46 = vpop.xlane.xlu0 %2550  ;;  %v2631_v47 = vpop.xlane.xlu1 %2630 }
 0x175   :  { %v2146_v19 = vadd.f32 %v2145_v28, %v2066_v27 }
 0x176   :  { %v2301_v34 = vpop.f32.mrb[26].mxu0  ;;  %v2381_v0 = vpop.f32.mrb[26].mxu1 }
 0x177   :  { %v2226_v35 = vadd.f32 %v2225_v31, %v2146_v19  ;;  %v2305_v36 = vmul.f32 %v2301_v34, %v2231_v13  ;;  %v3044_v1 = vpop.f32.mrb[27].mxu0  ;;  %v3051_v38 = vpop.f32.mrb[27].mxu1  ;;  %v2385_v39 = vmul.f32 %v2381_v0, %v2311_v14 }
 0x179   :  { %v2306_v23 = vadd.f32 %v2305_v36, %v2226_v35 }
 0x17a   :  { %v2461_v53 = vpop.f32.mrb[28].mxu0  ;;  %v2541_v40 = vpop.f32.mrb[28].mxu1 }
 0x17b   :  { %v2386_v41 = vadd.f32 %v2385_v39, %v2306_v23  ;;  %v2465_v42 = vmul.f32 %v2461_v53, %v2391_v32  ;;  %v3058_v43 = vpop.f32.mrb[29].mxu0  ;;  %v3065_v44 = vpop.f32.mrb[29].mxu1  ;;  %v2545_v45 = vmul.f32 %v2541_v40, %v2471_v33 }
 0x17d   :  { %v2466_v48 = vadd.f32 %v2465_v42, %v2386_v41 }
 0x17e   :  { %v2621_v49 = vpop.f32.mrb[30].mxu0  ;;  %v2701_v50 = vpop.f32.mrb[30].mxu1 }
 0x17f   :  { %v2546_v51 = vadd.f32 %v2545_v45, %v2466_v48  ;;  %v2625_v52 = vmul.f32 %v2621_v49, %v2551_v46  ;;  %v3072_v54 = vpop.f32.mrb[31].mxu0  ;;  %v3079_v55 = vpop.f32.mrb[31].mxu1  ;;  %v2705_v56 = vmul.f32 %v2701_v50, %v2631_v47 }
 0x181   :  { %v2626_v57 = vadd.f32 %v2625_v52, %v2546_v51 }
 0x183   :  { %v2706_v58 = vadd.f32 %v2705_v56, %v2626_v57 }
 0x185   :  { %2707 = vst.msk [vmem:[#allocation8] sm:$0xff] %vm67_vm2, %v2706_v58 }
 0x186   :  { %3266 = shalt.err (!%p3263_p0)
}
 0x187   :  { %s3267_s22 = scalar_lea.hbm %s3671_s7, 128 }
 0x188   :  { %p3268_p1 = scmp.ne.s32.totalorder %s3671_s7, %s3267_s22  ;;  %p3271_p2 = scmp.lt.u32.totalorder %s3267_s22, %s3671_s7 }
 0x18a   :  { %p3273_p3 = pnand %p3271_p2, %p3268_p1 }
 0x18c   :  { %3276 = shalt.err (!%p3273_p3)
}
 0x18d   :  { %2717 = dma.vmem_to_hbm [thread:$0]  %s2715_s18, 128, %s3671_s7, [#allocation4]  }
 0x18e   :  { %3281 = dma.done.wait [#allocation4], 128  }
 0x18f   :  { %3282 = vsyncadd [#allocation4], 4294967168 }
 0x190   :  { %2721 = vsyncpa [#allocation3], 1 }
 0x191   :  { %2722 = vsyncpa [#allocation6], 1 }
 0x192   :  { %2723 = vsyncpa [#allocation4], 1 }

</bundles_post_ra>
